<compile_context>
chip_gen: v6e
topology: v6e:2x2x1
jax: 0.10.0
libtpu: 0.0.40
codegen_flags: <defaults>
</compile_context>

<pallas_src>
import functools

import jax
import jax.numpy as jnp
import numpy as np
from jax.experimental import pallas as pl
from jax.experimental.pallas import tpu as pltpu

_BN_EPS = 1e-5


def _fcn_fused_kernel(*refs, num_blocks, kernel_sizes):
    """Entire FCN regressor fused into one kernel (single grid step).

    refs layout:
      refs[0]                 x_ref       (N, L0, C0)   input, NLC, f32
      refs[1 + 2*i]           w_ref_i     (K_i, Cin_i, Cout_i)
      refs[2 + 2*i]           p_ref_i     (3, Cout_i)   [bias; bn_scale; bn_shift]
                                          (1, Cout_i)   bias only, for the LAST block
                                          (BN affine of the last block is folded
                                           into the final projection params)
      refs[1 + 2*num_blocks]  fparams_ref (2, C_last)   row0 = folded final w,
                                                        row1[0] = folded final b
      refs[2 + 2*num_blocks]  o_ref       (N, L_f)      lane-dense output (L on lanes)
    """
    x_ref = refs[0]
    fparams_ref = refs[1 + 2 * num_blocks]
    o_ref = refs[2 + 2 * num_blocks]

    x = x_ref[...]  # f32 activations stay on-chip (values / vregs) between layers

    for i in range(num_blocks):
        w_ref = refs[1 + 2 * i]
        p_ref = refs[2 + 2 * i]
        k_sz = kernel_sizes[i]
        l_out = x.shape[1] - k_sz + 1
        c_out = w_ref.shape[2]

        # Conv1d (VALID, stride 1) as K shifted matmuls on the MXU.
        # Accumulator initialised directly from the k=0 tap.
        acc = jax.lax.dot_general(
            x[:, 0:l_out, :], w_ref[0],
            dimension_numbers=(((2,), (0,)), ((), ())),
            preferred_element_type=jnp.float32)
        for k in range(1, k_sz):
            acc = acc + jax.lax.dot_general(
                x[:, k:k + l_out, :], w_ref[k],
                dimension_numbers=(((2,), (0,)), ((), ())),
                preferred_element_type=jnp.float32)

        bias = p_ref[0:1, :].reshape(1, 1, c_out)
        z = jnp.maximum(acc + bias, 0.0)            # bias -> ReLU (VPU)

        if i < num_blocks - 1:
            # BatchNorm (eval, folded to scale/shift); Dropout(eval) == identity.
            scale = p_ref[1:2, :].reshape(1, 1, c_out)
            shift = p_ref[2:3, :].reshape(1, 1, c_out)
            x = z * scale + shift
        else:
            # Last block: its BN affine is folded into fparams (final projection).
            x = z

    # Final Conv1d(C_last -> 1, kernel 1): VPU multiply + cross-lane (XLU)
    # reduce; result written lane-dense as (N, L_f).
    c_last = fparams_ref.shape[1]
    wf = fparams_ref[0:1, :].reshape(1, 1, c_last)
    bf = fparams_ref[1:2, 0:1]                      # (1, 1)
    red = jnp.sum(x * wf, axis=-1)                  # (N, L_f)
    o_ref[...] = (red + bf).astype(o_ref.dtype)


def fcn_regressor_forward(features_ncl, params):
    """Pallas implementation of FCN_Regressor_Module.forward (eval mode)."""
    x = jnp.transpose(features_ncl, (0, 2, 1)).astype(jnp.float32)  # NCL -> NLC
    n, l0, c0 = x.shape

    blocks = params["blocks"]
    num_blocks = len(blocks)
    kernel_sizes = tuple(int(b["w"].shape[0]) for b in blocks)

    # Per-block folded BN scale/shift (eval semantics).
    scales, shifts = [], []
    for b in blocks:
        scale = b["gamma"] / jnp.sqrt(b["running_var"] + _BN_EPS)
        shifts.append(b["beta"] - b["running_mean"] * scale)
        scales.append(scale)

    # Fold the LAST block's BN affine through the (linear) final 1x1 conv:
    #   sum_c (relu(z)_c * s_c + t_c) * wf_c + bf
    # = sum_c relu(z)_c * (s_c * wf_c) + (sum_c t_c * wf_c + bf)
    pf = params["final"]
    wf = pf["w"].reshape(-1).astype(jnp.float32)            # (C_last,)
    bf = pf["b"].reshape(-1)[0].astype(jnp.float32)
    wf_fold = scales[-1].astype(jnp.float32) * wf
    bf_fold = bf + jnp.sum(shifts[-1].astype(jnp.float32) * wf)
    c_last = wf.shape[0]

    inputs = [x]
    in_specs = [pl.BlockSpec((n, l0, c0), lambda i: (0, 0, 0))]
    for bi, b in enumerate(blocks):
        k_sz, cin, cout = b["w"].shape
        inputs.append(b["w"].astype(jnp.float32))
        in_specs.append(pl.BlockSpec((k_sz, cin, cout), lambda i: (0, 0, 0)))
        if bi < num_blocks - 1:
            pblk = jnp.stack(
                [b["b"].astype(jnp.float32), scales[bi].astype(jnp.float32),
                 shifts[bi].astype(jnp.float32)], axis=0)    # (3, Cout)
        else:
            pblk = b["b"].astype(jnp.float32).reshape(1, cout)  # bias only
        inputs.append(pblk)
        in_specs.append(pl.BlockSpec(pblk.shape, lambda i: (0, 0)))

    fparams = (jnp.zeros((2, c_last), jnp.float32)
               .at[0, :].set(wf_fold)
               .at[1, 0].set(bf_fold))
    inputs.append(fparams)
    in_specs.append(pl.BlockSpec((2, c_last), lambda i: (0, 0)))

    l_f = l0 - sum(k - 1 for k in kernel_sizes)

    kernel = functools.partial(_fcn_fused_kernel, num_blocks=num_blocks,
                               kernel_sizes=kernel_sizes)

    out_nl = pl.pallas_call(
        kernel,
        out_shape=jax.ShapeDtypeStruct((n, l_f), jnp.float32),
        grid=(1,),
        in_specs=in_specs,
        out_specs=pl.BlockSpec((n, l_f), lambda i: (0, 0)),
        compiler_params=pltpu.CompilerParams(
            dimension_semantics=("arbitrary",)),
    )(*inputs)

    # (N, L_f) -> (N, 1, L_f) to match PyTorch NCL output of Conv1d(C, 1, 1).
    return out_nl[:, None, :]


def init_params(key, input_dims, channels, kernel_sizes):
    """Deterministic synthetic parameters matching the PyTorch module shapes."""
    blocks = []
    for idx, (cin, cout, k) in enumerate(zip(input_dims, channels, kernel_sizes)):
        kw, kb, kg, kbeta = jax.random.split(jax.random.fold_in(key, idx), 4)
        blocks.append(dict(
            # stored as (K, C_in, C_out); PyTorch stores (C_out, C_in, K)
            w=0.1 * jax.random.normal(kw, (k, cin, cout), jnp.float32),
            b=0.1 * jax.random.normal(kb, (cout,), jnp.float32),
            gamma=1.0 + 0.1 * jax.random.normal(kg, (cout,), jnp.float32),
            beta=0.1 * jax.random.normal(kbeta, (cout,), jnp.float32),
            running_mean=0.05 * jax.random.normal(
                jax.random.fold_in(kg, 1), (cout,), jnp.float32),
            running_var=1.0 + 0.1 * jax.random.uniform(
                jax.random.fold_in(kb, 1), (cout,), jnp.float32),
        ))
    kf = jax.random.fold_in(key, 10_000)
    kw, kb = jax.random.split(kf)
    final = dict(
        w=0.1 * jax.random.normal(kw, (1, channels[-1], 1), jnp.float32),
        b=0.1 * jax.random.normal(kb, (1,), jnp.float32),
    )
    return {"blocks": blocks, "final": final}


def reference_forward(features_ncl, params):
    """Pure-JAX reference (NCL layout, same eval-mode semantics, no folding)."""
    x = features_ncl
    for p in params["blocks"]:
        w_oik = jnp.transpose(p["w"], (2, 1, 0))  # (K,Cin,Cout)->(Cout,Cin,K)
        x = jax.lax.conv_general_dilated(
            x, w_oik, (1,), "VALID", dimension_numbers=("NCH", "OIH", "NCH"))
        x = x + p["b"][None, :, None]
        x = jnp.maximum(x, 0.0)
        scale = p["gamma"] / jnp.sqrt(p["running_var"] + _BN_EPS)
        shift = p["beta"] - p["running_mean"] * scale
        x = x * scale[None, :, None] + shift[None, :, None]
    pf = params["final"]
    w_oik = jnp.transpose(pf["w"], (2, 1, 0))
    x = jax.lax.conv_general_dilated(
        x, w_oik, (1,), "VALID", dimension_numbers=("NCH", "OIH", "NCH"))
    return x + pf["b"][None, :, None]


if __name__ == "__main__":
    key = jax.random.PRNGKey(0)

    # Small FCN config consistent with the module constructor.
    input_dims = [4, 8, 16]
    channels = [8, 16, 16]
    kernel_sizes = [5, 3, 3]
    dropout = 0.1  # identity in eval mode

    batch, seq_len = 2, 32
    kx, kp = jax.random.split(key)
    features = jax.random.normal(kx, (batch, input_dims[0], seq_len), jnp.float32)
    params = init_params(kp, input_dims, channels, kernel_sizes)

    out = fcn_regressor_forward(features, params)
    out = jax.block_until_ready(out)

    ref = jax.block_until_ready(reference_forward(features, params))
    np.testing.assert_allclose(np.asarray(out), np.asarray(ref),
                               rtol=1e-4, atol=1e-4)
    assert out.shape == (batch, 1, seq_len - sum(k - 1 for k in kernel_sizes))

    print("KERNEL_OK")
</pallas_src>

<mosaic_0001>
module attributes {stable_mosaic.version = 11 : i64} {
  func.func @_fcn_fused_kernel(%arg0: i32, %arg1: memref<2x32x4xf32, #tpu.memory_space<vmem>>, %arg2: memref<5x4x8xf32, #tpu.memory_space<vmem>>, %arg3: memref<3x8xf32, #tpu.memory_space<vmem>>, %arg4: memref<3x8x16xf32, #tpu.memory_space<vmem>>, %arg5: memref<3x16xf32, #tpu.memory_space<vmem>>, %arg6: memref<3x16x16xf32, #tpu.memory_space<vmem>>, %arg7: memref<1x16xf32, #tpu.memory_space<vmem>>, %arg8: memref<2x16xf32, #tpu.memory_space<vmem>>, %arg9: memref<2x24xf32, #tpu.memory_space<vmem>>) attributes {dimension_semantics = [#tpu.dimension_semantics<arbitrary>], iteration_bounds = array<i64: 1>, scalar_prefetch = 0 : i64, scratch_operands = 0 : i64, tpu.core_type = #tpu.core_type<tc>, window_params = [{pipeline_mode = #tpu.pipeline_mode<synchronous>, transform_indices = @transform_0, window_bounds = array<i64: 2, 32, 4>}, {pipeline_mode = #tpu.pipeline_mode<synchronous>, transform_indices = @transform_1, window_bounds = array<i64: 5, 4, 8>}, {pipeline_mode = #tpu.pipeline_mode<synchronous>, transform_indices = @transform_2, window_bounds = array<i64: 3, 8>}, {pipeline_mode = #tpu.pipeline_mode<synchronous>, transform_indices = @transform_3, window_bounds = array<i64: 3, 8, 16>}, {pipeline_mode = #tpu.pipeline_mode<synchronous>, transform_indices = @transform_4, window_bounds = array<i64: 3, 16>}, {pipeline_mode = #tpu.pipeline_mode<synchronous>, transform_indices = @transform_5, window_bounds = array<i64: 3, 16, 16>}, {pipeline_mode = #tpu.pipeline_mode<synchronous>, transform_indices = @transform_6, window_bounds = array<i64: 1, 16>}, {pipeline_mode = #tpu.pipeline_mode<synchronous>, transform_indices = @transform_7, window_bounds = array<i64: 2, 16>}, {pipeline_mode = #tpu.pipeline_mode<synchronous>, transform_indices = @transform_8, window_bounds = array<i64: 2, 24>}]} {
    %c0 = arith.constant 0 : index
    %c0_0 = arith.constant 0 : index
    %c0_1 = arith.constant 0 : index
    %0 = vector.load %arg1[%c0, %c0_0, %c0_1] : memref<2x32x4xf32, #tpu.memory_space<vmem>>, vector<2x32x4xf32>
    %1 = vector.extract_strided_slice %0 {offsets = [0, 0, 0], sizes = [2, 28, 4], strides = [1, 1, 1]} : vector<2x32x4xf32> to vector<2x28x4xf32>
    %c0_2 = arith.constant 0 : index
    %c0_3 = arith.constant 0 : index
    %c0_4 = arith.constant 0 : index
    %2 = vector.load %arg2[%c0_2, %c0_3, %c0_4] : memref<5x4x8xf32, #tpu.memory_space<vmem>>, vector<1x4x8xf32>
    %3 = vector.shape_cast %2 : vector<1x4x8xf32> to vector<4x8xf32>
    %cst = arith.constant dense<0.000000e+00> : vector<2x28x8xf32>
    %4 = tpu.matmul %1, %3, %cst {dimension_numbers = #tpu.dot_dimension_numbers<[2], [0], [0, 1], [1], [0, 0, 0, 1, 1, 1], [], []>} : vector<2x28x4xf32>, vector<4x8xf32>, vector<2x28x8xf32> -> vector<2x28x8xf32>
    %5 = vector.extract_strided_slice %0 {offsets = [0, 1, 0], sizes = [2, 28, 4], strides = [1, 1, 1]} : vector<2x32x4xf32> to vector<2x28x4xf32>
    %c1 = arith.constant 1 : index
    %c0_5 = arith.constant 0 : index
    %c0_6 = arith.constant 0 : index
    %6 = vector.load %arg2[%c1, %c0_5, %c0_6] : memref<5x4x8xf32, #tpu.memory_space<vmem>>, vector<1x4x8xf32>
    %7 = vector.shape_cast %6 : vector<1x4x8xf32> to vector<4x8xf32>
    %cst_7 = arith.constant dense<0.000000e+00> : vector<2x28x8xf32>
    %8 = tpu.matmul %5, %7, %cst_7 {dimension_numbers = #tpu.dot_dimension_numbers<[2], [0], [0, 1], [1], [0, 0, 0, 1, 1, 1], [], []>} : vector<2x28x4xf32>, vector<4x8xf32>, vector<2x28x8xf32> -> vector<2x28x8xf32>
    %9 = arith.addf %4, %8 : vector<2x28x8xf32>
    %10 = vector.extract_strided_slice %0 {offsets = [0, 2, 0], sizes = [2, 28, 4], strides = [1, 1, 1]} : vector<2x32x4xf32> to vector<2x28x4xf32>
    %c2 = arith.constant 2 : index
    %c0_8 = arith.constant 0 : index
    %c0_9 = arith.constant 0 : index
    %11 = vector.load %arg2[%c2, %c0_8, %c0_9] : memref<5x4x8xf32, #tpu.memory_space<vmem>>, vector<1x4x8xf32>
    %12 = vector.shape_cast %11 : vector<1x4x8xf32> to vector<4x8xf32>
    %cst_10 = arith.constant dense<0.000000e+00> : vector<2x28x8xf32>
    %13 = tpu.matmul %10, %12, %cst_10 {dimension_numbers = #tpu.dot_dimension_numbers<[2], [0], [0, 1], [1], [0, 0, 0, 1, 1, 1], [], []>} : vector<2x28x4xf32>, vector<4x8xf32>, vector<2x28x8xf32> -> vector<2x28x8xf32>
    %14 = arith.addf %9, %13 : vector<2x28x8xf32>
    %15 = vector.extract_strided_slice %0 {offsets = [0, 3, 0], sizes = [2, 28, 4], strides = [1, 1, 1]} : vector<2x32x4xf32> to vector<2x28x4xf32>
    %c3 = arith.constant 3 : index
    %c0_11 = arith.constant 0 : index
    %c0_12 = arith.constant 0 : index
    %16 = vector.load %arg2[%c3, %c0_11, %c0_12] : memref<5x4x8xf32, #tpu.memory_space<vmem>>, vector<1x4x8xf32>
    %17 = vector.shape_cast %16 : vector<1x4x8xf32> to vector<4x8xf32>
    %cst_13 = arith.constant dense<0.000000e+00> : vector<2x28x8xf32>
    %18 = tpu.matmul %15, %17, %cst_13 {dimension_numbers = #tpu.dot_dimension_numbers<[2], [0], [0, 1], [1], [0, 0, 0, 1, 1, 1], [], []>} : vector<2x28x4xf32>, vector<4x8xf32>, vector<2x28x8xf32> -> vector<2x28x8xf32>
    %19 = arith.addf %14, %18 : vector<2x28x8xf32>
    %20 = vector.extract_strided_slice %0 {offsets = [0, 4, 0], sizes = [2, 28, 4], strides = [1, 1, 1]} : vector<2x32x4xf32> to vector<2x28x4xf32>
    %c4 = arith.constant 4 : index
    %c0_14 = arith.constant 0 : index
    %c0_15 = arith.constant 0 : index
    %21 = vector.load %arg2[%c4, %c0_14, %c0_15] : memref<5x4x8xf32, #tpu.memory_space<vmem>>, vector<1x4x8xf32>
    %22 = vector.shape_cast %21 : vector<1x4x8xf32> to vector<4x8xf32>
    %cst_16 = arith.constant dense<0.000000e+00> : vector<2x28x8xf32>
    %23 = tpu.matmul %20, %22, %cst_16 {dimension_numbers = #tpu.dot_dimension_numbers<[2], [0], [0, 1], [1], [0, 0, 0, 1, 1, 1], [], []>} : vector<2x28x4xf32>, vector<4x8xf32>, vector<2x28x8xf32> -> vector<2x28x8xf32>
    %24 = arith.addf %19, %23 : vector<2x28x8xf32>
    %c0_17 = arith.constant 0 : index
    %c0_18 = arith.constant 0 : index
    %25 = vector.load %arg3[%c0_17, %c0_18] : memref<3x8xf32, #tpu.memory_space<vmem>>, vector<1x8xf32>
    %26 = vector.shape_cast %25 : vector<1x8xf32> to vector<1x1x8xf32>
    %27 = vector.broadcast %26 : vector<1x1x8xf32> to vector<2x28x8xf32>
    %28 = arith.addf %24, %27 : vector<2x28x8xf32>
    %cst_19 = arith.constant 0.000000e+00 : f32
    %29 = vector.broadcast %cst_19 : f32 to vector<2x28x8xf32>
    %30 = arith.maximumf %28, %29 : vector<2x28x8xf32>
    %c1_20 = arith.constant 1 : index
    %c0_21 = arith.constant 0 : index
    %31 = vector.load %arg3[%c1_20, %c0_21] : memref<3x8xf32, #tpu.memory_space<vmem>>, vector<1x8xf32>
    %32 = vector.shape_cast %31 : vector<1x8xf32> to vector<1x1x8xf32>
    %c2_22 = arith.constant 2 : index
    %c0_23 = arith.constant 0 : index
    %33 = vector.load %arg3[%c2_22, %c0_23] : memref<3x8xf32, #tpu.memory_space<vmem>>, vector<1x8xf32>
    %34 = vector.shape_cast %33 : vector<1x8xf32> to vector<1x1x8xf32>
    %35 = vector.broadcast %32 : vector<1x1x8xf32> to vector<2x28x8xf32>
    %36 = arith.mulf %30, %35 : vector<2x28x8xf32>
    %37 = vector.broadcast %34 : vector<1x1x8xf32> to vector<2x28x8xf32>
    %38 = arith.addf %36, %37 : vector<2x28x8xf32>
    %39 = vector.extract_strided_slice %38 {offsets = [0, 0, 0], sizes = [2, 26, 8], strides = [1, 1, 1]} : vector<2x28x8xf32> to vector<2x26x8xf32>
    %c0_24 = arith.constant 0 : index
    %c0_25 = arith.constant 0 : index
    %c0_26 = arith.constant 0 : index
    %40 = vector.load %arg4[%c0_24, %c0_25, %c0_26] : memref<3x8x16xf32, #tpu.memory_space<vmem>>, vector<1x8x16xf32>
    %41 = vector.shape_cast %40 : vector<1x8x16xf32> to vector<8x16xf32>
    %cst_27 = arith.constant dense<0.000000e+00> : vector<2x26x16xf32>
    %42 = tpu.matmul %39, %41, %cst_27 {dimension_numbers = #tpu.dot_dimension_numbers<[2], [0], [0, 1], [1], [0, 0, 0, 1, 1, 1], [], []>} : vector<2x26x8xf32>, vector<8x16xf32>, vector<2x26x16xf32> -> vector<2x26x16xf32>
    %43 = vector.extract_strided_slice %38 {offsets = [0, 1, 0], sizes = [2, 26, 8], strides = [1, 1, 1]} : vector<2x28x8xf32> to vector<2x26x8xf32>
    %c1_28 = arith.constant 1 : index
    %c0_29 = arith.constant 0 : index
    %c0_30 = arith.constant 0 : index
    %44 = vector.load %arg4[%c1_28, %c0_29, %c0_30] : memref<3x8x16xf32, #tpu.memory_space<vmem>>, vector<1x8x16xf32>
    %45 = vector.shape_cast %44 : vector<1x8x16xf32> to vector<8x16xf32>
    %cst_31 = arith.constant dense<0.000000e+00> : vector<2x26x16xf32>
    %46 = tpu.matmul %43, %45, %cst_31 {dimension_numbers = #tpu.dot_dimension_numbers<[2], [0], [0, 1], [1], [0, 0, 0, 1, 1, 1], [], []>} : vector<2x26x8xf32>, vector<8x16xf32>, vector<2x26x16xf32> -> vector<2x26x16xf32>
    %47 = arith.addf %42, %46 : vector<2x26x16xf32>
    %48 = vector.extract_strided_slice %38 {offsets = [0, 2, 0], sizes = [2, 26, 8], strides = [1, 1, 1]} : vector<2x28x8xf32> to vector<2x26x8xf32>
    %c2_32 = arith.constant 2 : index
    %c0_33 = arith.constant 0 : index
    %c0_34 = arith.constant 0 : index
    %49 = vector.load %arg4[%c2_32, %c0_33, %c0_34] : memref<3x8x16xf32, #tpu.memory_space<vmem>>, vector<1x8x16xf32>
    %50 = vector.shape_cast %49 : vector<1x8x16xf32> to vector<8x16xf32>
    %cst_35 = arith.constant dense<0.000000e+00> : vector<2x26x16xf32>
    %51 = tpu.matmul %48, %50, %cst_35 {dimension_numbers = #tpu.dot_dimension_numbers<[2], [0], [0, 1], [1], [0, 0, 0, 1, 1, 1], [], []>} : vector<2x26x8xf32>, vector<8x16xf32>, vector<2x26x16xf32> -> vector<2x26x16xf32>
    %52 = arith.addf %47, %51 : vector<2x26x16xf32>
    %c0_36 = arith.constant 0 : index
    %c0_37 = arith.constant 0 : index
    %53 = vector.load %arg5[%c0_36, %c0_37] : memref<3x16xf32, #tpu.memory_space<vmem>>, vector<1x16xf32>
    %54 = vector.shape_cast %53 : vector<1x16xf32> to vector<1x1x16xf32>
    %55 = vector.broadcast %54 : vector<1x1x16xf32> to vector<2x26x16xf32>
    %56 = arith.addf %52, %55 : vector<2x26x16xf32>
    %cst_38 = arith.constant 0.000000e+00 : f32
    %57 = vector.broadcast %cst_38 : f32 to vector<2x26x16xf32>
    %58 = arith.maximumf %56, %57 : vector<2x26x16xf32>
    %c1_39 = arith.constant 1 : index
    %c0_40 = arith.constant 0 : index
    %59 = vector.load %arg5[%c1_39, %c0_40] : memref<3x16xf32, #tpu.memory_space<vmem>>, vector<1x16xf32>
    %60 = vector.shape_cast %59 : vector<1x16xf32> to vector<1x1x16xf32>
    %c2_41 = arith.constant 2 : index
    %c0_42 = arith.constant 0 : index
    %61 = vector.load %arg5[%c2_41, %c0_42] : memref<3x16xf32, #tpu.memory_space<vmem>>, vector<1x16xf32>
    %62 = vector.shape_cast %61 : vector<1x16xf32> to vector<1x1x16xf32>
    %63 = vector.broadcast %60 : vector<1x1x16xf32> to vector<2x26x16xf32>
    %64 = arith.mulf %58, %63 : vector<2x26x16xf32>
    %65 = vector.broadcast %62 : vector<1x1x16xf32> to vector<2x26x16xf32>
    %66 = arith.addf %64, %65 : vector<2x26x16xf32>
    %67 = vector.extract_strided_slice %66 {offsets = [0, 0, 0], sizes = [2, 24, 16], strides = [1, 1, 1]} : vector<2x26x16xf32> to vector<2x24x16xf32>
    %c0_43 = arith.constant 0 : index
    %c0_44 = arith.constant 0 : index
    %c0_45 = arith.constant 0 : index
    %68 = vector.load %arg6[%c0_43, %c0_44, %c0_45] : memref<3x16x16xf32, #tpu.memory_space<vmem>>, vector<1x16x16xf32>
    %69 = vector.shape_cast %68 : vector<1x16x16xf32> to vector<16x16xf32>
    %cst_46 = arith.constant dense<0.000000e+00> : vector<2x24x16xf32>
    %70 = tpu.matmul %67, %69, %cst_46 {dimension_numbers = #tpu.dot_dimension_numbers<[2], [0], [0, 1], [1], [0, 0, 0, 1, 1, 1], [], []>} : vector<2x24x16xf32>, vector<16x16xf32>, vector<2x24x16xf32> -> vector<2x24x16xf32>
    %71 = vector.extract_strided_slice %66 {offsets = [0, 1, 0], sizes = [2, 24, 16], strides = [1, 1, 1]} : vector<2x26x16xf32> to vector<2x24x16xf32>
    %c1_47 = arith.constant 1 : index
    %c0_48 = arith.constant 0 : index
    %c0_49 = arith.constant 0 : index
    %72 = vector.load %arg6[%c1_47, %c0_48, %c0_49] : memref<3x16x16xf32, #tpu.memory_space<vmem>>, vector<1x16x16xf32>
    %73 = vector.shape_cast %72 : vector<1x16x16xf32> to vector<16x16xf32>
    %cst_50 = arith.constant dense<0.000000e+00> : vector<2x24x16xf32>
    %74 = tpu.matmul %71, %73, %cst_50 {dimension_numbers = #tpu.dot_dimension_numbers<[2], [0], [0, 1], [1], [0, 0, 0, 1, 1, 1], [], []>} : vector<2x24x16xf32>, vector<16x16xf32>, vector<2x24x16xf32> -> vector<2x24x16xf32>
    %75 = arith.addf %70, %74 : vector<2x24x16xf32>
    %76 = vector.extract_strided_slice %66 {offsets = [0, 2, 0], sizes = [2, 24, 16], strides = [1, 1, 1]} : vector<2x26x16xf32> to vector<2x24x16xf32>
    %c2_51 = arith.constant 2 : index
    %c0_52 = arith.constant 0 : index
    %c0_53 = arith.constant 0 : index
    %77 = vector.load %arg6[%c2_51, %c0_52, %c0_53] : memref<3x16x16xf32, #tpu.memory_space<vmem>>, vector<1x16x16xf32>
    %78 = vector.shape_cast %77 : vector<1x16x16xf32> to vector<16x16xf32>
    %cst_54 = arith.constant dense<0.000000e+00> : vector<2x24x16xf32>
    %79 = tpu.matmul %76, %78, %cst_54 {dimension_numbers = #tpu.dot_dimension_numbers<[2], [0], [0, 1], [1], [0, 0, 0, 1, 1, 1], [], []>} : vector<2x24x16xf32>, vector<16x16xf32>, vector<2x24x16xf32> -> vector<2x24x16xf32>
    %80 = arith.addf %75, %79 : vector<2x24x16xf32>
    %c0_55 = arith.constant 0 : index
    %c0_56 = arith.constant 0 : index
    %81 = vector.load %arg7[%c0_55, %c0_56] : memref<1x16xf32, #tpu.memory_space<vmem>>, vector<1x16xf32>
    %82 = vector.shape_cast %81 : vector<1x16xf32> to vector<1x1x16xf32>
    %83 = vector.broadcast %82 : vector<1x1x16xf32> to vector<2x24x16xf32>
    %84 = arith.addf %80, %83 : vector<2x24x16xf32>
    %cst_57 = arith.constant 0.000000e+00 : f32
    %85 = vector.broadcast %cst_57 : f32 to vector<2x24x16xf32>
    %86 = arith.maximumf %84, %85 : vector<2x24x16xf32>
    %c0_58 = arith.constant 0 : index
    %c0_59 = arith.constant 0 : index
    %87 = vector.load %arg8[%c0_58, %c0_59] : memref<2x16xf32, #tpu.memory_space<vmem>>, vector<1x16xf32>
    %88 = vector.shape_cast %87 : vector<1x16xf32> to vector<1x1x16xf32>
    %c1_60 = arith.constant 1 : index
    %c0_61 = arith.constant 0 : index
    %89 = vector.load %arg8[%c1_60, %c0_61] : memref<2x16xf32, #tpu.memory_space<vmem>>, vector<1x1xf32>
    %90 = vector.broadcast %88 : vector<1x1x16xf32> to vector<2x24x16xf32>
    %91 = arith.mulf %86, %90 : vector<2x24x16xf32>
    %cst_62 = arith.constant dense<0.000000e+00> : vector<2x24xf32>
    %92 = vector.multi_reduction <add>, %91, %cst_62 [2] : vector<2x24x16xf32> to vector<2x24xf32>
    %93 = vector.broadcast %89 : vector<1x1xf32> to vector<2x24xf32>
    %94 = arith.addf %92, %93 : vector<2x24xf32>
    %c0_63 = arith.constant 0 : index
    %c0_64 = arith.constant 0 : index
    %95 = vector.load %arg9[%c0_63, %c0_64] : memref<2x24xf32, #tpu.memory_space<vmem>>, vector<2x24xf32>
    tpu.vector_store %arg9[%c0_63, %c0_64], %94 {strides = array<i32>} : memref<2x24xf32, #tpu.memory_space<vmem>>, vector<2x24xf32>,
    return
  }
  func.func @transform_0(%arg0: i32) -> (i32, i32, i32) {
    %c0_i32 = arith.constant 0 : i32
    %c0_i32_0 = arith.constant 0 : i32
    %c0_i32_1 = arith.constant 0 : i32
    %c0_i32_2 = arith.constant 0 : i32
    return %c0_i32, %c0_i32_0, %c0_i32_1 : i32, i32, i32
  }
  func.func @transform_1(%arg0: i32) -> (i32, i32, i32) {
    %c0_i32 = arith.constant 0 : i32
    %c0_i32_0 = arith.constant 0 : i32
    %c0_i32_1 = arith.constant 0 : i32
    %c0_i32_2 = arith.constant 0 : i32
    return %c0_i32, %c0_i32_0, %c0_i32_1 : i32, i32, i32
  }
  func.func @transform_2(%arg0: i32) -> (i32, i32) {
    %c0_i32 = arith.constant 0 : i32
    %c0_i32_0 = arith.constant 0 : i32
    %c0_i32_1 = arith.constant 0 : i32
    return %c0_i32, %c0_i32_0 : i32, i32
  }
  func.func @transform_3(%arg0: i32) -> (i32, i32, i32) {
    %c0_i32 = arith.constant 0 : i32
    %c0_i32_0 = arith.constant 0 : i32
    %c0_i32_1 = arith.constant 0 : i32
    %c0_i32_2 = arith.constant 0 : i32
    return %c0_i32, %c0_i32_0, %c0_i32_1 : i32, i32, i32
  }
  func.func @transform_4(%arg0: i32) -> (i32, i32) {
    %c0_i32 = arith.constant 0 : i32
    %c0_i32_0 = arith.constant 0 : i32
    %c0_i32_1 = arith.constant 0 : i32
    return %c0_i32, %c0_i32_0 : i32, i32
  }
  func.func @transform_5(%arg0: i32) -> (i32, i32, i32) {
    %c0_i32 = arith.constant 0 : i32
    %c0_i32_0 = arith.constant 0 : i32
    %c0_i32_1 = arith.constant 0 : i32
    %c0_i32_2 = arith.constant 0 : i32
    return %c0_i32, %c0_i32_0, %c0_i32_1 : i32, i32, i32
  }
  func.func @transform_6(%arg0: i32) -> (i32, i32) {
    %c0_i32 = arith.constant 0 : i32
    %c0_i32_0 = arith.constant 0 : i32
    %c0_i32_1 = arith.constant 0 : i32
    return %c0_i32, %c0_i32_0 : i32, i32
  }
  func.func @transform_7(%arg0: i32) -> (i32, i32) {
    %c0_i32 = arith.constant 0 : i32
    %c0_i32_0 = arith.constant 0 : i32
    %c0_i32_1 = arith.constant 0 : i32
    return %c0_i32, %c0_i32_0 : i32, i32
  }
  func.func @transform_8(%arg0: i32) -> (i32, i32) {
    %c0_i32 = arith.constant 0 : i32
    %c0_i32_0 = arith.constant 0 : i32
    %c0_i32_1 = arith.constant 0 : i32
    return %c0_i32, %c0_i32_0 : i32, i32
  }
}

</mosaic_0001>

<bundles_post_ra>
// kernel: tpu_custom_call.1
= control target key start
LH: loop header
LB: loop body
LE: loop exit
PB: predicated region body
PF: predicated region fallthrough
CT: control target
= control target key end

     0   :  { %13 = vsyncpa [#allocation3], 0  ;;  %s5338_s0 = inlined_call_operand.vmem [shape: f32[2,32,4], index: 0, kind: input, shape index: {}]   ;;  %s5339_s1 = inlined_call_operand.hbm [shape: f32[5,4,8], index: 1, kind: input, shape index: {}]   ;;  %s5340_s2 = inlined_call_operand.vmem [shape: f32[3,8], index: 2, kind: input, shape index: {}]   ;;  %s5341_s3 = inlined_call_operand.vmem [shape: f32[3,8,16], index: 3, kind: input, shape index: {}]   ;;  %s5342_s4 = inlined_call_operand.vmem [shape: f32[3,16], index: 4, kind: input, shape index: {}]   ;;  %s5343_s5 = inlined_call_operand.vmem [shape: f32[3,16,16], index: 5, kind: input, shape index: {}]   ;;  %s5344_s6 = inlined_call_operand.hbm [shape: f32[1,16], index: 6, kind: input, shape index: {}]   ;;  %s5345_s7 = inlined_call_operand.vmem [shape: f32[2,16], index: 7, kind: input, shape index: {}]   ;;  %s5346_s8 = inlined_call_operand.hbm [shape: f32[2,24], index: 8, kind: output, shape index: {}]  }
   0x1   :  { %14 = vsyncpa [#allocation6], 0 }
   0x2   :  { %15 = vsyncpa [#allocation4], 0  ;;  %s3810_s27 = smov [#allocation2]  }
   0x3   :  { %s23_s28 = sshll.u32 %s3810_s27, 4  ;;  %s24_s28 = int_to_ptr.vmem [resolvable:$true] %s23_s28 }
   0x4   :  { %s3752_s29 = scalar_lea.vmem %s24_s28, 320  ;;  %p3757_p1 = scmp.lt.s32.totalorder %s24_s28, %s24_s28 }
   0x5   :  { %p3753_p0 = scmp.ne.s32.totalorder %s24_s28, %s3752_s29  ;;  %p3758_p2 = scmp.lt.s32.totalorder %s3752_s29, %s3752_s29 }
   0x7   :  { %p3759_p3 = por %p3758_p2, %p3757_p1 }
   0x9   :  { %p3760_p4 = pnand %p3759_p3, %p3753_p0 }
   0xb   :  { %3763 = shalt.err (!%p3760_p4)
}
   0xc   :  { %s3811_s30 = smov 64   ;;  %s3812_s9 = smov 4  }
   0xd   :  { %29 = dma.hbm_to_vmem [thread:$0]  %s5339_s1, 320, %s24_s28, [#allocation3], %s3811_s30, %s3811_s30, %s3812_s9  }
   0xe   :  { %s3813_s12 = smov [#allocation5]  }
   0xf   :  { %s44_s13 = sshll.u32 %s3813_s12, 4  ;;  %s45_s13 = int_to_ptr.vmem [resolvable:$true] %s44_s13 }
  0x10   :  { %s3772_s14 = scalar_lea.vmem %s45_s13, 16  ;;  %s3776_s15 = scalar_lea.vmem %s45_s13, 32 }
  0x11   :  { %p3773_p5 = scmp.ne.s32.totalorder %s45_s13, %s3772_s14  ;;  %p3777_p6 = scmp.lt.s32.totalorder %s45_s13, %s45_s13 }
  0x12   :  { %p3778_p7 = scmp.lt.s32.totalorder %s3776_s15, %s3772_s14 }
  0x14   :  { %p3779_p8 = por %p3778_p7, %p3777_p6 }
  0x16   :  { %p3780_p9 = pnand %p3779_p8, %p3773_p5 }
  0x18   :  { %3783 = shalt.err (!%p3780_p9)
}
  0x19   :  { %47 = dma.hbm_to_vmem [thread:$0]  %s5344_s6, 16, %s45_s13, [#allocation6]  }
  0x1a   :  { %3804 = dma.done.wait [#allocation3], 320  }
  0x1b   :  { %3805 = vsyncadd [#allocation3], 4294966976 }
  0x1c   :  { %3806 = dma.done.wait [#allocation6], 16  }
  0x1d   :  { %3807 = vsyncadd [#allocation6], 4294967280  ;;  %v3814_v0 = vmov 0.0   ;;  %vm3815_vm0 = vmmov 0   ;;  %vm1187_vm1 = vcmask 1042434   ;;  %vm611_vm2 = vcmask 1040384  }
  0x1e   :  { %3499 = vmatprep.subr.mxu0 %v3814_v0  ;;  %3722 = vmatprep.subr.mxu1 %v3814_v0  ;;  %vm152_vm3 = vcmask 1043456   ;;  %vm612_vm4 = vcmask 1044484   ;;  %vm1188_vm5 = vmor %vm611_vm2, %vm1187_vm1  ;;  %vm83_vm6 = vcmask 1042432   ;;  %vm84_vm7 = vcmask 1046532   ;;  %v66_v2 = vld [vmem:[#allocation2 + $0x4] sm:$0xf] }
  0x1f   :  { %3501 = vmatprep.mubr.msk.f32.mxu0 %vm3815_vm0, %v3814_v0  ;;  %3519 = vmatprep.mubr.msk.f32.mxu1 %vm3815_vm0, %v3814_v0  ;;  %vm3877_vm8 = vmor %vm1188_vm5, %vm612_vm4  ;;  %v3884_v3 = vld [vmem:[%s5338_s0] sm:$0xff]  ;;  %v3889_v4 = vld [vmem:[%s5338_s0 + $0x8] sm:$0xff]  ;;  %vm137_vm10 = vcmask 31744   ;;  %vm403_vm11 = vcmask 1041408   ;;  %vm404_vm12 = vcmask 1045508   ;;  %vm1190_vm15 = vcmask 1046534  }
  0x20   :  { %3500 = vmatpush3.msk.msra.mxu0 %vm152_vm3, %v66_v2  ;;  %3723 = vmatpush3.msk.msra.mxu1 %vm152_vm3, %v66_v2  ;;  %v3895_v5 = vcombine.high %v3884_v3, %v3884_v3  ;;  %v3306_v6 = vrot.slane %v3884_v3, 9  ;;  %v91_v7 = vrot.slane %v3889_v4, 5  ;;  %v3902_v8 = vld [vmem:[%s5338_s0 + $0x30] sm:$0xff]  ;;  %v3907_v9 = vld [vmem:[%s5338_s0 + $0x38] sm:$0xff]  ;;  %v3911_v10 = vcombine.high %v3889_v4, %v3889_v4  ;;  %vm3915_vm9 = vmor %vm83_vm6, %vm84_vm7  ;;  %s3817_s14 = smov [#allocation7]  }
  0x21   :  { %3545 = vmatprep.subr.mxu0 %v3814_v0  ;;  %v3921_v12 = vcombine.high %v3902_v8, %v3902_v8  ;;  %v3925_v13 = vcombine.high %v3907_v9, %v3907_v9  ;;  %v125_v14 = vrot.slane %v3907_v9, 5  ;;  %3522 = vmatprep.subr.mxu1 %v3814_v0  ;;  %v3932_v15 = vld [vmem:[%s5338_s0 + $0x10] sm:$0xff]  ;;  %v3946_v27 = vld [vmem:[%s5338_s0 + $0x18] sm:$0xff]  ;;  %v3959_v32 = vld [vmem:[%s5338_s0 + $0x20] sm:$0xff]  ;;  %v119_v60 = vrot.slane %v3902_v8, 5  ;;  %s3296_s15 = sshll.u32 %s3817_s14, 4  ;;  %s3297_s15 = int_to_ptr.vmem [resolvable:$true] %s3296_s15 }
  0x22   :  { %v88_v16 = vrot.slane %v3895_v5, 5  ;;  %v93_v17 = vrot.slane %v91_v7, 4  ;;  %v94_v18 = vrot.slane %v3911_v10, 5  ;;  %v97_v19 = vrot.slane %v3932_v15, 5  ;;  %v402_v38 = vld [vmem:[#allocation2 + $0x8] sm:$0xf]  ;;  %vm4048_vm13 = vmor %vm403_vm11, %vm404_vm12  ;;  %p3789_p11 = scmp.lt.s32.totalorder %s3297_s15, %s3297_s15 }
  0x23   :  { %v122_v20 = vrot.slane %v3921_v12, 5  ;;  %v127_v21 = vrot.slane %v125_v14, 4  ;;  %v128_v22 = vrot.slane %v3925_v13, 5  ;;  %v3954_v30 = vcombine.high %v3932_v15, %v3932_v15  ;;  %v3974_v41 = vld [vmem:[%s5338_s0 + $0x28] sm:$0xff]  ;;  %v64_v43 = vld [vmem:[#allocation2] sm:$0xf]  ;;  %vm4089_vm14 = vmor %vm611_vm2, %vm612_vm4 }
  0x24   :  { %v89_v23 = vsel %vm3915_vm9, %v3306_v6, %v88_v16  ;;  %v90_v24 = vrot.slane %v88_v16, 4  ;;  %v95_v25 = vsel %vm3915_vm9, %v93_v17, %v94_v18  ;;  %v96_v26 = vrot.slane %v94_v18, 4  ;;  %v610_v56 = vld [vmem:[#allocation2 + $0xc] sm:$0xf]  ;;  %vm4359_vm1 = vmor %vm3877_vm8, %vm1190_vm15  ;;  %s3784_s16 = scalar_lea.vmem %s3297_s15, 32 }
  0x25   :  { %v124_v28 = vrot.slane %v122_v20, 4  ;;  %v129_v29 = vsel %vm3915_vm9, %v127_v21, %v128_v22  ;;  %v99_v31 = vrot.slane %v97_v19, 4  ;;  %v256_v35 = vcombine.low %v3884_v3, %v3895_v5  ;;  %p3785_p10 = scmp.ne.s32.totalorder %s3297_s15, %s3784_s16  ;;  %p3790_p12 = scmp.lt.s32.totalorder %s3784_s16, %s3784_s16 }
  0x26   :  { %v92_v33 = vsel %vm3915_vm9, %v90_v24, %v91_v7  ;;  %v98_v34 = vsel %vm3915_vm9, %v96_v26, %v97_v19  ;;  %v100_v39 = vrot.slane %v3954_v30, 5  ;;  %v103_v40 = vrot.slane %v3946_v27, 5 }
  0x27   :  { %v130_v36 = vcombine.low %v89_v23, %v92_v33  ;;  %v126_v37 = vsel %vm3915_vm9, %v124_v28, %v125_v14  ;;  %v131_v44 = vcombine.low %v95_v25, %v98_v34  ;;  %v3978_v45 = vcombine.high %v3946_v27, %v3946_v27  ;;  %p3791_p13 = por %p3790_p12, %p3789_p11 }
  0x28   :  { %v136_v42 = vcombine.low %v126_v37, %v129_v29  ;;  %v3982_v46 = vcombine.high %v3959_v32, %v3959_v32  ;;  %v101_v47 = vsel %vm3915_vm9, %v99_v31, %v100_v39  ;;  %v102_v48 = vrot.slane %v100_v39, 4 }
  0x29   :  { %3502 = vmatmul.mubr.msk.f32.vlgmr.msra.gmra.mxu0 %vm137_vm10, %v130_v36  ;;  %v105_v49 = vrot.slane %v103_v40, 4  ;;  %v3307_v50 = vrot.slane %v3959_v32, 9  ;;  %v106_v51 = vrot.slane %v3978_v45, 5  ;;  %v3994_v53 = vcombine.high %v3974_v41, %v3974_v41  ;;  %p3792_p0 = pnand %p3791_p13, %p3785_p10 }
  0x2a   :  { %3520 = vmatmul.mubr.msk.f32.vlgmr.msra.gmra.mxu1 %vm137_vm10, %v136_v42  ;;  %3546 = vmatpush3.msk.msra.mxu0 %vm152_vm3, %v402_v38  ;;  %v110_v52 = vrot.slane %v3982_v46, 5  ;;  %v113_v54 = vrot.slane %v3974_v41, 5  ;;  %v104_v55 = vsel %vm3915_vm9, %v102_v48, %v103_v40  ;;  %v257_v58 = vcombine.low %v3889_v4, %v3911_v10 }
  0x2b   :  { %3504 = vmatprep.mubr.msk.f32.mxu0 %vm3815_vm0, %v3814_v0  ;;  %3523 = vmatpush3.msk.msra.mxu1 %vm152_vm3, %v64_v43  ;;  %v132_v57 = vcombine.low %v101_v47, %v104_v55  ;;  %v107_v59 = vsel %vm3915_vm9, %v105_v49, %v106_v51  ;;  %v116_v2 = vrot.slane %v3994_v53, 5  ;;  %v258_v7 = vcombine.low %v3932_v15, %v3954_v30  ;;  %v818_v55 = vld [vmem:[#allocation2 + $0x10] sm:$0xf] }
  0x2c   :  { %3524 = vmatprep.mubr.msk.f32.mxu1 %vm3815_vm0, %v3814_v0  ;;  %3568 = vmatprep.subr.mxu1 %v3814_v0  ;;  %v111_v61 = vsel %vm3915_vm9, %v3307_v50, %v110_v52  ;;  %v112_v62 = vrot.slane %v110_v52, 4  ;;  %v115_v63 = vrot.slane %v113_v54, 4  ;;  %v121_v14 = vrot.slane %v119_v60, 4 }
  0x2d   :  { %3505 = vmatmul.mubr.msk.f32.gmra.mxu0 %vm137_vm10, %v131_v44  ;;  %3591 = vmatprep.subr.mxu0 %v3814_v0  ;;  %v133_v6 = vcombine.low %v107_v59, %v111_v61  ;;  %v118_v18 = vrot.slane %v116_v2, 4  ;;  %v408_v19 = vrot.slane %v3895_v5, 6  ;;  %v259_v22 = vcombine.low %v3946_v27, %v3959_v32 }
  0x2e   :  { %3525 = vmatmul.mubr.msk.f32.vlgmr.msra.gmra.mxu1 %vm137_vm10, %v256_v35  ;;  %3507 = vmatprep.mubr.msk.f32.mxu0 %vm3815_vm0, %v3814_v0  ;;  %v114_v16 = vsel %vm3915_vm9, %v112_v62, %v113_v54  ;;  %v117_v17 = vsel %vm3915_vm9, %v115_v63, %v116_v2  ;;  %v123_v23 = vsel %vm3915_vm9, %v121_v14, %v122_v20  ;;  %v3324_v24 = vrot.slane %v3884_v3, 10 }
  0x2f   :  { %3527 = vmatprep.mubr.msk.f32.mxu1 %vm3815_vm0, %v3814_v0  ;;  %3569 = vmatpush3.msk.msra.mxu1 %vm152_vm3, %v610_v56  ;;  %v134_v21 = vcombine.low %v114_v16, %v117_v17  ;;  %v120_v25 = vsel %vm3915_vm9, %v118_v18, %v119_v60  ;;  %v410_v28 = vrot.slane %v408_v19, 4  ;;  %v411_v29 = vrot.slane %v3889_v4, 6 }
  0x30   :  { %3614 = vmatprep.subr.mxu1 %v3814_v0  ;;  %v414_v31 = vrot.slane %v3911_v10, 6  ;;  %v260_v20 = vcombine.low %v3982_v46, %v3974_v41  ;;  %v135_v33 = vcombine.low %v120_v25, %v123_v23  ;;  %v409_v11 = vsel %vm4048_vm13, %v3324_v24, %v408_v19 }
  0x31   :  { %3508 = vmatmul.mubr.msk.f32.gmra.mxu0 %vm137_vm10, %v132_v57  ;;  %v413_v34 = vrot.slane %v411_v29, 4  ;;  %v420_v35 = vrot.slane %v3954_v30, 6  ;;  %v412_v36 = vsel %vm4048_vm13, %v410_v28, %v411_v29  ;;  %v417_v38 = vrot.slane %v3932_v15, 6 }
  0x32   :  { %3528 = vmatmul.mubr.msk.f32.gmra.mxu1 %vm137_vm10, %v257_v58  ;;  %3510 = vmatprep.mubr.msk.f32.mxu0 %vm3815_vm0, %v3814_v0  ;;  %v416_v37 = vrot.slane %v414_v31, 4  ;;  %v616_v39 = vrot.slane %v3895_v5, 7  ;;  %v261_v40 = vcombine.low %v3994_v53, %v3902_v8  ;;  %v423_v42 = vrot.slane %v3946_v27, 6 }
  0x33   :  { %3530 = vmatprep.mubr.msk.f32.mxu1 %vm3815_vm0, %v3814_v0  ;;  %v622_v43 = vrot.slane %v3911_v10, 7  ;;  %v450_v44 = vcombine.low %v409_v11, %v412_v36  ;;  %v415_v47 = vsel %vm4048_vm13, %v413_v34, %v414_v31  ;;  %v419_v48 = vrot.slane %v417_v38, 4 }
  0x34   :  { %v422_v49 = vrot.slane %v420_v35, 4  ;;  %v418_v50 = vsel %vm4048_vm13, %v416_v37, %v417_v38  ;;  %v3334_v51 = vrot.slane %v3884_v3, 11  ;;  %v618_v52 = vrot.slane %v616_v39, 4 }
  0x35   :  { %3511 = vmatmul.mubr.msk.f32.gmra.mxu0 %vm137_vm10, %v133_v6  ;;  %v619_v54 = vrot.slane %v3889_v4, 7  ;;  %v425_v57 = vrot.slane %v423_v42, 4  ;;  %v426_v58 = vrot.slane %v3978_v45, 6  ;;  %v3325_v59 = vrot.slane %v3959_v32, 10 }
  0x36   :  { %3531 = vmatmul.mubr.msk.f32.gmra.mxu1 %vm137_vm10, %v258_v7  ;;  %3513 = vmatprep.mubr.msk.f32.mxu0 %vm3815_vm0, %v3814_v0  ;;  %v433_v3 = vrot.slane %v3974_v41, 6  ;;  %v430_v60 = vrot.slane %v3982_v46, 6  ;;  %v624_v62 = vrot.slane %v622_v43, 4  ;;  %v625_v63 = vrot.slane %v3932_v15, 7 }
  0x37   :  { %3533 = vmatprep.mubr.msk.f32.mxu1 %vm3815_vm0, %v3814_v0  ;;  %v621_v61 = vrot.slane %v619_v54, 4  ;;  %v262_v2 = vcombine.low %v3921_v12, %v3907_v9  ;;  %v451_v6 = vcombine.low %v415_v47, %v418_v50  ;;  %v421_v7 = vsel %vm4048_vm13, %v419_v48, %v420_v35 }
  0x38   :  { %v628_v14 = vrot.slane %v3954_v30, 7  ;;  %v424_v16 = vsel %vm4048_vm13, %v422_v49, %v423_v42  ;;  %v617_v17 = vsel %vm4089_vm14, %v3334_v51, %v616_v39  ;;  %v620_v18 = vsel %vm4089_vm14, %v618_v52, %v619_v54 }
  0x39   :  { %3514 = vmatmul.mubr.msk.f32.gmra.mxu0 %vm137_vm10, %v134_v21  ;;  %v427_v19 = vsel %vm4048_vm13, %v425_v57, %v426_v58  ;;  %v432_v21 = vrot.slane %v430_v60, 4  ;;  %v436_v23 = vrot.slane %v3994_v53, 6  ;;  %v431_v24 = vsel %vm4048_vm13, %v3325_v59, %v430_v60 }
  0x3a   :  { %3534 = vmatmul.mubr.msk.f32.gmra.mxu1 %vm137_vm10, %v259_v22  ;;  %3516 = vmatprep.mubr.msk.f32.mxu0 %vm3815_vm0, %v3814_v0  ;;  %v435_v22 = vrot.slane %v433_v3, 4  ;;  %v623_v25 = vsel %vm4089_vm14, %v621_v61, %v622_v43  ;;  %v626_v28 = vsel %vm4089_vm14, %v624_v62, %v625_v63  ;;  %v627_v29 = vrot.slane %v625_v63, 4 }
  0x3b   :  { %3536 = vmatprep.mubr.msk.f32.mxu1 %vm3815_vm0, %v3814_v0  ;;  %v452_v31 = vcombine.low %v421_v7, %v424_v16  ;;  %v658_v11 = vcombine.low %v617_v17, %v620_v18  ;;  %v439_v34 = vrot.slane %v3902_v8, 6  ;;  %v453_v35 = vcombine.low %v427_v19, %v431_v24 }
  0x3c   :  { %v659_v36 = vcombine.low %v623_v25, %v626_v28  ;;  %v434_v37 = vsel %vm4048_vm13, %v432_v21, %v433_v3  ;;  %v437_v38 = vsel %vm4048_vm13, %v435_v22, %v436_v23  ;;  %v629_v39 = vsel %vm4089_vm14, %v627_v29, %v628_v14 }
  0x3d   :  { %3517 = vmatmul.mubr.msk.f32.gmra.mxu0 %vm137_vm10, %v135_v33  ;;  %v631_v33 = vrot.slane %v3946_v27, 7  ;;  %v442_v42 = vrot.slane %v3921_v12, 6  ;;  %v634_v47 = vrot.slane %v3978_v45, 7  ;;  %v3335_v48 = vrot.slane %v3959_v32, 11 }
  0x3e   :  { %3537 = vmatmul.mubr.msk.f32.gmra.mxu1 %vm137_vm10, %v260_v20  ;;  %3547 = vmatprep.mubr.msk.f32.mxu0 %vm3815_vm0, %v3814_v0  ;;  %v630_v20 = vrot.slane %v628_v14, 4  ;;  %v824_v49 = vcombine.low %v3902_v8, %v3921_v12  ;;  %v441_v50 = vrot.slane %v439_v34, 4  ;;  %v638_v51 = vrot.slane %v3982_v46, 7 }
  0x3f   :  { %3539 = vmatprep.mubr.msk.f32.mxu1 %vm3815_vm0, %v3814_v0  ;;  %v633_v43 = vrot.slane %v631_v33, 4  ;;  %v445_v52 = vrot.slane %v3907_v9, 6  ;;  %v825_v54 = vcombine.low %v3907_v9, %v3925_v13  ;;  %v641_v45 = vrot.slane %v3974_v41, 7 }
  0x40   :  { %v444_v59 = vrot.slane %v442_v42, 4  ;;  %v443_v3 = vsel %vm4048_vm13, %v441_v50, %v442_v42  ;;  %v639_v60 = vsel %vm4089_vm14, %v3335_v48, %v638_v51  ;;  %v448_v62 = vrot.slane %v3925_v13, 6 }
  0x41   :  { %3548 = vmatmul.mubr.msk.f32.vlgmr.msra.gmra.mxu0 %vm137_vm10, %v450_v44  ;;  %v632_v44 = vsel %vm4089_vm14, %v630_v20, %v631_v33  ;;  %v635_v46 = vsel %vm4089_vm14, %v633_v43, %v634_v47  ;;  %v447_v61 = vrot.slane %v445_v52, 4  ;;  %v640_v63 = vrot.slane %v638_v51, 4 }
  0x42   :  { %3540 = vmatmul.mubr.msk.f32.gmra.mxu1 %vm137_vm10, %v261_v40  ;;  %3592 = vmatpush3.msk.msra.mxu0 %vm152_vm3, %v818_v55  ;;  %v438_v40 = vrot.slane %v436_v23, 4  ;;  %v454_v55 = vcombine.low %v434_v37, %v437_v38  ;;  %v660_v57 = vcombine.low %v629_v39, %v632_v44  ;;  %v647_v7 = vrot.slane %v3902_v8, 7  ;;  %v1058_v8 = vld [vmem:[%s5341_s3] sm:$0xff] }
  0x43   :  { %3542 = vmatprep.mubr.msk.f32.mxu1 %vm3815_vm0, %v3814_v0  ;;  %3550 = vmatprep.mubr.msk.f32.mxu0 %vm3815_vm0, %v3814_v0  ;;  %v661_v16 = vcombine.low %v635_v46, %v639_v60  ;;  %v446_v17 = vsel %vm4048_vm13, %v444_v59, %v445_v52  ;;  %v449_v18 = vsel %vm4048_vm13, %v447_v61, %v448_v62  ;;  %v650_v19 = vrot.slane %v3921_v12, 7 }
  0x44   :  { %3637 = vmatprep.subr.mxu0 %v3814_v0  ;;  %v440_v58 = vsel %vm4048_vm13, %v438_v40, %v439_v34  ;;  %v653_v21 = vrot.slane %v3907_v9, 7  ;;  %v642_v22 = vsel %vm4089_vm14, %v640_v63, %v641_v45  ;;  %v649_v25 = vrot.slane %v647_v7, 4 }
  0x45   :  { %3551 = vmatmul.mubr.msk.f32.gmra.mxu0 %vm137_vm10, %v451_v6  ;;  %v644_v6 = vrot.slane %v3994_v53, 7  ;;  %v455_v14 = vcombine.low %v440_v58, %v443_v3  ;;  %v456_v28 = vcombine.low %v446_v17, %v449_v18  ;;  %v656_v29 = vrot.slane %v3925_v13, 7 }
  0x46   :  { %3543 = vmatmul.mubr.msk.f32.gmra.mxu1 %vm137_vm10, %v262_v2  ;;  %3553 = vmatprep.mubr.msk.f32.mxu0 %vm3815_vm0, %v3814_v0  ;;  %v643_v2 = vrot.slane %v641_v45, 4  ;;  %v651_v20 = vsel %vm4089_vm14, %v649_v25, %v650_v19  ;;  %v652_v33 = vrot.slane %v650_v19, 4  ;;  %v819_v34 = vcombine.low %v3895_v5, %v3889_v4 }
  0x47   :  { %3570 = vmatprep.mubr.msk.f32.mxu1 %vm3815_vm0, %v3814_v0  ;;  %v646_v24 = vrot.slane %v644_v6, 4  ;;  %v820_v4 = vcombine.low %v3911_v10, %v3932_v15  ;;  %v821_v56 = vcombine.low %v3954_v30, %v3946_v27  ;;  %v3344_v10 = vcombine.high %v3946_v27, %v3959_v32  ;;  %v3356_v27 = vld [vmem:[%s5341_s3 + $0x8] sm:$0xff] }
  0x48   :  { %v645_v23 = vsel %vm4089_vm14, %v643_v2, %v644_v6  ;;  %v823_v15 = vcombine.low %v3974_v41, %v3994_v53  ;;  %vm1382_vm2 = vcmask 64512   ;;  %vm3262_vm3 = vcmask 130112  }
  0x49   :  { %3554 = vmatmul.mubr.msk.f32.gmra.mxu0 %vm137_vm10, %v452_v31  ;;  %v662_v26 = vcombine.low %v642_v22, %v645_v23  ;;  %v648_v31 = vsel %vm4089_vm14, %v646_v24, %v647_v7  ;;  %v3816_v22 = vmov 1983009808   ;;  %v5347_v24 = vlaneseq }
  0x4a   :  { %3571 = vmatmul.mubr.msk.f32.vlgmr.msra.gmra.mxu1 %vm137_vm10, %v658_v11  ;;  %3556 = vmatprep.mubr.msk.f32.mxu0 %vm3815_vm0, %v3814_v0  ;;  %v655_v11 = vrot.slane %v653_v21, 4  ;;  %v1076_v23 = vunpack.c.l.s4 %v3816_v22  ;;  %vm3269_vm4 = vcmask 195712   ;;  %vm3285_vm5 = vcmask 1041409  }
  0x4b   :  { %3573 = vmatprep.mubr.msk.f32.mxu1 %vm3815_vm0, %v3814_v0  ;;  %3615 = vmatpush3.msra.mxu1 %v3356_v27  ;;  %vm3288_vm6 = vcmask 189440  }
  0x4c   :  { %v657_v37 = vsel %vm4089_vm14, %v655_v11, %v656_v29  ;;  %3660 = vmatprep.subr.mxu1 %v3814_v0  ;;  %v4275_v29 = vld [vmem:[%s5340_s2] ss:$0 sm:$0xff]  ;;  %v4285_v11 = vld [vmem:[%s5340_s2 + $0x2] ss:$0 sm:$0xff] }
  0x4d   :  { %3557 = vmatmul.mubr.msk.f32.gmra.mxu0 %vm137_vm10, %v453_v35  ;;  %v663_v35 = vcombine.low %v648_v31, %v651_v20 }
  0x4e   :  { %3574 = vmatmul.mubr.msk.f32.gmra.mxu1 %vm137_vm10, %v659_v36  ;;  %3559 = vmatprep.mubr.msk.f32.mxu0 %vm3815_vm0, %v3814_v0  ;;  %v654_v36 = vsel %vm4089_vm14, %v652_v33, %v653_v21  ;;  %v4280_v33 = vld [vmem:[%s5340_s2 + $0x1] ss:$0 sm:$0xff] }
  0x4f   :  { %3576 = vmatprep.mubr.msk.f32.mxu1 %vm3815_vm0, %v3814_v0  ;;  %v664_v5 = vcombine.low %v654_v36, %v657_v37 }
  0x51   :  { %3560 = vmatmul.mubr.msk.f32.gmra.mxu0 %vm137_vm10, %v454_v55 }
  0x52   :  { %3577 = vmatmul.mubr.msk.f32.gmra.mxu1 %vm137_vm10, %v660_v57  ;;  %3562 = vmatprep.mubr.msk.f32.mxu0 %vm3815_vm0, %v3814_v0 }
  0x53   :  { %3579 = vmatprep.mubr.msk.f32.mxu1 %vm3815_vm0, %v3814_v0 }
  0x55   :  { %3563 = vmatmul.mubr.msk.f32.gmra.mxu0 %vm137_vm10, %v455_v14 }
  0x56   :  { %3580 = vmatmul.mubr.msk.f32.gmra.mxu1 %vm137_vm10, %v661_v16  ;;  %3565 = vmatprep.mubr.msk.f32.mxu0 %vm3815_vm0, %v3814_v0 }
  0x57   :  { %3582 = vmatprep.mubr.msk.f32.mxu1 %vm3815_vm0, %v3814_v0 }
  0x59   :  { %3566 = vmatmul.mubr.msk.f32.gmra.mxu0 %vm137_vm10, %v456_v28 }
  0x5a   :  { %3583 = vmatmul.mubr.msk.f32.gmra.mxu1 %vm137_vm10, %v662_v26  ;;  %3593 = vmatprep.mubr.msk.f32.mxu0 %vm3815_vm0, %v3814_v0 }
  0x5b   :  { %3585 = vmatprep.mubr.msk.f32.mxu1 %vm3815_vm0, %v3814_v0 }
  0x5d   :  { %3594 = vmatmul.mubr.msk.f32.vlgmr.msra.gmra.mxu0 %vm137_vm10, %v819_v34  ;;  %v1077_v34 = vunpack.c.0.s8 %v1076_v23 }
  0x5e   :  { %3586 = vmatmul.mubr.msk.f32.gmra.mxu1 %vm137_vm10, %v663_v35  ;;  %3596 = vmatprep.mubr.msk.f32.mxu0 %vm3815_vm0, %v3814_v0  ;;  %v4288_v35 = vshrl.u32 %v5347_v24, 7 }
  0x5f   :  { %3588 = vmatprep.mubr.msk.f32.mxu1 %vm3815_vm0, %v3814_v0  ;;  %3638 = vmatpush3.msra.mxu0 %v1058_v8 }
  0x61   :  { %3597 = vmatmul.mubr.msk.f32.gmra.mxu0 %vm137_vm10, %v820_v4 }
  0x62   :  { %3589 = vmatmul.mubr.msk.f32.gmra.mxu1 %vm137_vm10, %v664_v5  ;;  %3599 = vmatprep.mubr.msk.f32.mxu0 %vm3815_vm0, %v3814_v0 }
  0x63   :  { %3616 = vmatprep.mubr.msk.f32.mxu1 %vm3815_vm0, %v3814_v0 }
  0x65   :  { %3600 = vmatmul.mubr.msk.f32.gmra.mxu0 %vm137_vm10, %v821_v56 }
  0x66   :  { %3602 = vmatprep.mubr.msk.f32.mxu0 %vm3815_vm0, %v3814_v0 }
  0x69   :  { %3603 = vmatmul.mubr.msk.f32.gmra.mxu0 %vm137_vm10, %v3344_v10 }
  0x6a   :  { %3605 = vmatprep.mubr.msk.f32.mxu0 %vm3815_vm0, %v3814_v0 }
  0x6d   :  { %3606 = vmatmul.mubr.msk.f32.gmra.mxu0 %vm137_vm10, %v823_v15 }
  0x6e   :  { %3608 = vmatprep.mubr.msk.f32.mxu0 %vm3815_vm0, %v3814_v0 }
  0x71   :  { %3609 = vmatmul.mubr.msk.f32.gmra.mxu0 %vm137_vm10, %v824_v49 }
  0x72   :  { %3611 = vmatprep.mubr.msk.f32.mxu0 %vm3815_vm0, %v3814_v0 }
  0x75   :  { %3612 = vmatmul.mubr.msk.f32.gmra.mxu0 %vm137_vm10, %v825_v54 }
  0x76   :  { %3639 = vmatprep.mubr.msk.f32.mxu0 %vm3815_vm0, %v3814_v0 }
  0xe9   :  { %v222_v12 = vpop.f32.mrf.mxu0 }
  0xea   :  { %v4262_v30 = vpop.f32.mrf.mxu1 }
  0xeb   :  { %v3503_v9 = vpop.f32.mrf.mxu0 }
  0xec   :  { %v3521_v13 = vpop.f32.mrf.mxu1  ;;  %v4300_v9 = vcombine.high %v4280_v33, %v4280_v33 }
  0xed   :  { %v227_v32 = vpop.f32.mrf.mxu0  ;;  %v4304_v13 = vcombine.high %v4285_v11, %v4285_v11 }
  0xee   :  { %v346_v41 = vpop.f32.mrf.mxu1 }
  0xef   :  { %v3506_v53 = vpop.f32.mrf.mxu0  ;;  %v347_v31 = vadd.f32 %v346_v41, %v222_v12  ;;  %v4296_v12 = vcombine.high %v4275_v29, %v4275_v29 }
  0xf0   :  { %v3526_v38 = vpop.f32.mrf.mxu1 }
  0xf1   :  { %v232_v39 = vpop.f32.mrf.mxu0 }
  0xf2   :  { %v351_v40 = vpop.f32.mrf.mxu1 }
  0xf3   :  { %v3509_v42 = vpop.f32.mrf.mxu0  ;;  %v352_v36 = vadd.f32 %v351_v40, %v227_v32  ;;  %v387_v32 = vcombine.high %v347_v31, %v347_v31 }
  0xf4   :  { %v3529_v43 = vpop.f32.mrf.mxu1 }
  0xf5   :  { %v237_v44 = vpop.f32.mrf.mxu0  ;;  %v388_v40 = vcombine.high %v352_v36, %v352_v36 }
  0xf6   :  { %v356_v47 = vpop.f32.mrf.mxu1 }
  0xf7   :  { %v3512_v48 = vpop.f32.mrf.mxu0  ;;  %v357_v37 = vadd.f32 %v356_v47, %v232_v39  ;;  %v4310_v39 = vsub.s32 %v1077_v34, %v4288_v35 }
  0xf8   :  { %v3532_v49 = vpop.f32.mrf.mxu1 }
  0xf9   :  { %v242_v50 = vpop.f32.mrf.mxu0  ;;  %v389_v42 = vcombine.high %v357_v37, %v357_v37 }
  0xfa   :  { %v361_v51 = vpop.f32.mrf.mxu1 }
  0xfb   :  { %v3515_v52 = vpop.f32.mrf.mxu0  ;;  %v362_v5 = vadd.f32 %v361_v51, %v237_v44 }
  0xfc   :  { %v3535_v54 = vpop.f32.mrf.mxu1 }
  0xfd   :  { %v247_v45 = vpop.f32.mrf.mxu0  ;;  %v390_v48 = vcombine.high %v362_v5, %v362_v5 }
  0xfe   :  { %v366_v55 = vpop.f32.mrf.mxu1 }
  0xff   :  { %v3518_v57 = vpop.f32.mrf.mxu0  ;;  %v367_v56 = vadd.f32 %v366_v55, %v242_v50 }
 0x100   :  { %v3538_v58 = vpop.f32.mrf.mxu1 }
 0x101   :  { %v540_v46 = vpop.f32.mrf.mxu0  ;;  %v391_v49 = vcombine.high %v367_v56, %v367_v56 }
 0x102   :  { %v371_v59 = vpop.f32.mrf.mxu1  ;;  %v581_v10 = vcombine.high %v540_v46, %v540_v46  ;;  %v595_v50 = vadd.f32 %v540_v46, %v347_v31 }
 0x103   :  { %v3549_v3 = vpop.f32.mrf.mxu0  ;;  %v372_v27 = vadd.f32 %v371_v59, %v247_v45 }
 0x104   :  { %v3541_v60 = vpop.f32.mrf.mxu1  ;;  %v596_v51 = vadd.f32 %v581_v10, %v387_v32 }
 0x105   :  { %v545_v61 = vpop.f32.mrf.mxu0  ;;  %v392_v54 = vcombine.high %v372_v27, %v372_v27 }
 0x106   :  { %v376_v62 = vpop.f32.mrf.mxu1  ;;  %v582_v53 = vcombine.high %v545_v61, %v545_v61  ;;  %v597_v45 = vadd.f32 %v545_v61, %v352_v36 }
 0x107   :  { %v3552_v63 = vpop.f32.mrf.mxu0  ;;  %v4307_v41 = vadd.f32 %v376_v62, %v4262_v30 }
 0x108   :  { %v3544_v2 = vpop.f32.mrf.mxu1  ;;  %v598_v59 = vadd.f32 %v582_v53, %v388_v40 }
 0x109   :  { %v550_v6 = vpop.f32.mrf.mxu0  ;;  %v393_v58 = vcombine.high %v4307_v41, %v4307_v41 }
 0x10a   :  { %v748_v7 = vpop.f32.mrf.mxu1  ;;  %v583_v43 = vcombine.high %v550_v6, %v550_v6  ;;  %v599_v3 = vadd.f32 %v550_v6, %v357_v37 }
 0x10b   :  { %v3555_v14 = vpop.f32.mrf.mxu0  ;;  %v789_v44 = vcombine.high %v748_v7, %v748_v7  ;;  %v803_v60 = vadd.f32 %v748_v7, %v595_v50 }
 0x10c   :  { %v3572_v16 = vpop.f32.mrf.mxu1  ;;  %v600_v63 = vadd.f32 %v583_v43, %v389_v42 }
 0x10d   :  { %v4264_v17 = vpop.f32.mrf.mxu0  ;;  %v804_v46 = vadd.f32 %v789_v44, %v596_v51 }
 0x10e   :  { %v4266_v18 = vpop.f32.mrf.mxu1  ;;  %v584_v30 = vcombine.high %v4264_v17, %v4264_v17  ;;  %v601_v16 = vadd.f32 %v4264_v17, %v362_v5 }
 0x10f   :  { %v3558_v19 = vpop.f32.mrf.mxu0  ;;  %v790_v55 = vcombine.high %v4266_v18, %v4266_v18 }
 0x110   :  { %v3575_v21 = vpop.f32.mrf.mxu1  ;;  %v805_v19 = vadd.f32 %v4266_v18, %v597_v45 }
 0x111   :  { %v4268_v25 = vpop.f32.mrf.mxu0  ;;  %v806_v6 = vadd.f32 %v790_v55, %v598_v59 }
 0x112   :  { %v4270_v28 = vpop.f32.mrf.mxu1  ;;  %v585_v2 = vcombine.high %v4268_v25, %v4268_v25  ;;  %v603_v34 = vadd.f32 %v4268_v25, %v367_v56 }
 0x113   :  { %v3561_v26 = vpop.f32.mrf.mxu0  ;;  %v791_v61 = vcombine.high %v4270_v28, %v4270_v28  ;;  %v807_v36 = vadd.f32 %v4270_v28, %v599_v3 }
 0x114   :  { %v3578_v20 = vpop.f32.mrf.mxu1  ;;  %v602_v26 = vadd.f32 %v584_v30, %v390_v48  ;;  %v604_v5 = vadd.f32 %v585_v2, %v391_v49 }
 0x115   :  { %v4290_v4 = vpop.f32.mrf.mxu0  ;;  %v808_v10 = vadd.f32 %v791_v61, %v600_v63 }
 0x116   :  { %v4292_v15 = vpop.f32.mrf.mxu1  ;;  %v586_v7 = vcombine.high %v4290_v4, %v4290_v4 }
 0x117   :  { %v3564_v8 = vpop.f32.mrf.mxu0  ;;  %v792_v31 = vcombine.high %v4292_v15, %v4292_v15  ;;  %v4334_v25 = vadd.f32 %v4292_v15, %v601_v16 }
 0x118   :  { %v3581_v38 = vpop.f32.mrf.mxu1  ;;  %v605_v8 = vadd.f32 %v4290_v4, %v372_v27  ;;  %v606_v48 = vadd.f32 %v586_v7, %v392_v54 }
 0x119   :  { %v570_v47 = vpop.f32.mrf.mxu0  ;;  %v4336_v28 = vadd.f32 %v792_v31, %v602_v26 }
 0x11a   :  { %v768_v52 = vpop.f32.mrf.mxu1  ;;  %v587_v32 = vcombine.high %v570_v47, %v570_v47  ;;  %v607_v30 = vadd.f32 %v570_v47, %v4307_v41 }
 0x11b   :  { %v3567_v57 = vpop.f32.mrf.mxu0  ;;  %v793_v56 = vcombine.high %v768_v52, %v768_v52 }
 0x11c   :  { %v3584_v62 = vpop.f32.mrf.mxu1  ;;  %v608_v55 = vadd.f32 %v587_v32, %v393_v58  ;;  %v811_v57 = vadd.f32 %v768_v52, %v603_v34 }
 0x11d   :  { %v909_v14 = vpop.f32.mrf.mxu0  ;;  %v812_v63 = vadd.f32 %v793_v56, %v604_v5 }
 0x11e   :  { %v773_v21 = vpop.f32.mrf.mxu1  ;;  %v950_v22 = vcombine.high %v909_v14, %v909_v14  ;;  %v964_v23 = vadd.f32 %v909_v14, %v803_v60 }
 0x11f   :  { %v3595_v20 = vpop.f32.mrf.mxu0  ;;  %v794_v59 = vcombine.high %v773_v21, %v773_v21 }
 0x120   :  { %v965_v17 = vadd.f32 %v950_v22, %v804_v46  ;;  %v986_v18 = vadd.f32 %v4275_v29, %v964_v23  ;;  %v3587_v37 = vpop.f32.mrf.mxu1  ;;  %v813_v46 = vadd.f32 %v773_v21, %v605_v8 }
 0x121   :  { %v914_v53 = vpop.f32.mrf.mxu0  ;;  %v814_v58 = vadd.f32 %v794_v59, %v606_v48 }
 0x122   :  { %v987_v38 = vadd.f32 %v4296_v12, %v965_v17  ;;  %v1000_v40 = vmax.f32 %v986_v18, 0.0  ;;  %v778_v42 = vpop.f32.mrf.mxu1  ;;  %v951_v43 = vcombine.high %v914_v53, %v914_v53  ;;  %v966_v44 = vadd.f32 %v914_v53, %v805_v19 }
 0x123   :  { %v3598_v50 = vpop.f32.mrf.mxu0  ;;  %v795_v19 = vcombine.high %v778_v42, %v778_v42  ;;  %v4353_v7 = vadd.f32 %v778_v42, %v607_v30 }
 0x124   :  { %v1001_v49 = vmax.f32 %v987_v38, 0.0  ;;  %v1023_v51 = vmul.f32 %v4280_v33, %v1000_v40  ;;  %v967_v4 = vadd.f32 %v951_v43, %v806_v6  ;;  %v988_v27 = vadd.f32 %v4275_v29, %v966_v44  ;;  %v3590_v45 = vpop.f32.mrf.mxu1 }
 0x125   :  { %v919_v54 = vpop.f32.mrf.mxu0  ;;  %v816_v56 = vadd.f32 %v795_v19, %v608_v55 }
 0x126   :  { %v1024_v15 = vmul.f32 %v4300_v9, %v1001_v49  ;;  %v1044_v3 = vadd.f32 %v4285_v11, %v1023_v51  ;;  %v989_v60 = vadd.f32 %v4296_v12, %v967_v4  ;;  %v1002_v62 = vmax.f32 %v988_v27, 0.0 }
 0x127   :  { %v952_v2 = vcombine.high %v919_v54, %v919_v54  ;;  %v968_v61 = vadd.f32 %v919_v54, %v807_v36  ;;  %v3601_v14 = vpop.f32.mrf.mxu0 }
 0x128   :  { %v1045_v16 = vadd.f32 %v4304_v13, %v1024_v15  ;;  %v1081_v41 = vrot.slane %v1044_v3, %v4310_v39  ;;  %v1003_v47 = vmax.f32 %v989_v60, 0.0  ;;  %v1025_v52 = vmul.f32 %v4280_v33, %v1002_v62 }
 0x129   :  { %v969_v22 = vadd.f32 %v952_v2, %v808_v10  ;;  %v990_v23 = vadd.f32 %v4275_v29, %v968_v61  ;;  %v924_v26 = vpop.f32.mrf.mxu0 }
 0x12a   :  { %v4348_v6 = vcombine.high %v1081_v41, %v1081_v41  ;;  %v4351_v21 = vrot.slane %v1045_v16, %v4310_v39  ;;  %v1026_v31 = vmul.f32 %v4300_v9, %v1003_v47  ;;  %v3357_v34 = vrot.slane %v1081_v41, 9 }
 0x12b   :  { %v1046_v36 = vadd.f32 %v4285_v11, %v1025_v52  ;;  %v991_v17 = vadd.f32 %v4296_v12, %v969_v22  ;;  %v1004_v18 = vmax.f32 %v990_v23, 0.0  ;;  %v3604_v37 = vpop.f32.mrf.mxu0  ;;  %v953_v40 = vcombine.high %v924_v26, %v924_v26 }
 0x12c   :  { %v4367_v5 = vcombine.high %v4351_v21, %v4351_v21  ;;  %v1194_v10 = vrot.slane %v4348_v6, 7  ;;  %v1197_v8 = vrot.slane %v4351_v21, 7  ;;  %v1497_v1 = vcombine.low %v1081_v41, %v4348_v6 }
 0x12d   :  { %v1047_v32 = vadd.f32 %v4304_v13, %v1026_v31  ;;  %v4374_v53 = vrot.slane %v1046_v36, %v4310_v39  ;;  %v1005_v38 = vmax.f32 %v991_v17, 0.0  ;;  %v929_v42 = vpop.f32.mrf.mxu0  ;;  %v1027_v59 = vmul.f32 %v4280_v33, %v1004_v18 }
 0x12e   :  { %v4378_v43 = vsel %vm4359_vm1, %v3357_v34, %v1194_v10  ;;  %v1196_v44 = vrot.slane %v1194_v10, 2  ;;  %v1200_v48 = vrot.slane %v4367_v5, 7  ;;  %v4381_v50 = vrot.slane %v1197_v8, 2 }
 0x12f   :  { %v1498_v49 = vcombine.low %v4351_v21, %v4367_v5  ;;  %v1505_v51 = vrot.slane %v1497_v1, %v4310_v39  ;;  %v4387_v4 = vrot.slane %v1047_v32, %v4310_v39  ;;  %v3607_v27 = vpop.f32.mrf.mxu0  ;;  %v1203_v55 = vrot.slane %v4374_v53, 7 }
 0x130   :  { %v4391_v45 = vsel %vm4359_vm1, %v1196_v44, %v1197_v8  ;;  %v4395_v30 = vrot.slane %v1200_v48, 2  ;;  %v1028_v15 = vmul.f32 %v4300_v9, %v1005_v38  ;;  %v970_v3 = vadd.f32 %v924_v26, %v4334_v25 }
 0x131   :  { %v1272_v54 = vcombine.low %v4378_v43, %v4391_v45  ;;  %v971_v60 = vadd.f32 %v953_v40, %v4336_v28  ;;  %v934_v62 = vpop.f32.mrf.mxu0  ;;  %v1048_v2 = vadd.f32 %v4285_v11, %v1027_v59  ;;  %v954_v61 = vcombine.high %v929_v42, %v929_v42 }
 0x132   :  { %v972_v14 = vadd.f32 %v929_v42, %v811_v57  ;;  %v955_v16 = vcombine.high %v934_v62, %v934_v62  ;;  %v1049_v41 = vadd.f32 %v4304_v13, %v1028_v15  ;;  %v992_v47 = vadd.f32 %v4275_v29, %v970_v3 }
 0x133   :  { %v993_v52 = vadd.f32 %v4275_v29, %v971_v60  ;;  %v974_v19 = vadd.f32 %v934_v62, %v813_v46  ;;  %v3610_v22 = vpop.f32.mrf.mxu0  ;;  %v4409_v23 = vrot.slane %v1048_v2, %v4310_v39  ;;  %v973_v25 = vadd.f32 %v954_v61, %v812_v63 }
 0x134   :  { %v994_v28 = vadd.f32 %v4296_v12, %v972_v14  ;;  %v975_v26 = vadd.f32 %v955_v16, %v814_v58  ;;  %v4413_v31 = vrot.slane %v1049_v41, %v4310_v39  ;;  %v1006_v57 = vmax.f32 %v992_v47, 0.0 }
 0x135   :  { %v1007_v34 = vmax.f32 %v993_v52, 0.0  ;;  %v996_v36 = vadd.f32 %v4296_v12, %v974_v19  ;;  %v939_v17 = vpop.f32.mrf.mxu0  ;;  %v995_v18 = vadd.f32 %v4275_v29, %v973_v25  ;;  %v1512_v10 = vrot.slane %v1498_v49, %v4310_v39 }
 0x136   :  { %v1008_v37 = vmax.f32 %v994_v28, 0.0  ;;  %v997_v46 = vadd.f32 %v4275_v29, %v975_v26  ;;  %v1029_v63 = vmul.f32 %v4280_v33, %v1006_v57  ;;  %v956_v1 = vcombine.high %v939_v17, %v939_v17 }
 0x137   :  { %v1030_v8 = vmul.f32 %v4280_v33, %v1007_v34  ;;  %v1010_v58 = vmax.f32 %v996_v36, 0.0  ;;  %v3613_v32 = vpop.f32.mrf.mxu0  ;;  %v1009_v38 = vmax.f32 %v995_v18, 0.0  ;;  %v1513_v44 = vcombine.low %v1505_v51, %v1512_v10 }
 0x138   :  { %v1031_v40 = vmul.f32 %v4300_v9, %v1008_v37  ;;  %v1011_v42 = vmax.f32 %v997_v46, 0.0  ;;  %v1050_v27 = vadd.f32 %v4285_v11, %v1029_v63  ;;  %v976_v49 = vadd.f32 %v939_v17, %v4353_v7  ;;  %v3373_v32 = vld [vmem:[%s5341_s3 + $0x10] sm:$0xff] }
 0x139   :  { %v1051_v59 = vadd.f32 %v4285_v11, %v1030_v8  ;;  %v1033_v15 = vmul.f32 %v4300_v9, %v1010_v58  ;;  %v1032_v3 = vmul.f32 %v4280_v33, %v1009_v38  ;;  %3640 = vmatmul.mubr.msk.f32.vlgmr.msra.gmra.mxu0 %vm1382_vm2, %v1513_v44  ;;  %v977_v2 = vadd.f32 %v956_v1, %v816_v56 }
 0x13a   :  { %v1052_v60 = vadd.f32 %v4304_v13, %v1031_v40  ;;  %v1034_v62 = vmul.f32 %v4280_v33, %v1011_v42  ;;  %v4431_v61 = vrot.slane %v1050_v27, %v4310_v39  ;;  %v998_v16 = vadd.f32 %v4296_v12, %v976_v49  ;;  %3642 = vmatprep.mubr.msk.f32.mxu0 %vm3815_vm0, %v3814_v0 }
 0x13b   :  { %v4434_v51 = vrot.slane %v1051_v59, %v4310_v39  ;;  %v1054_v14 = vadd.f32 %v4304_v13, %v1033_v15  ;;  %v1053_v7 = vadd.f32 %v4285_v11, %v1032_v3  ;;  %v999_v47 = vadd.f32 %v4275_v29, %v977_v2 }
 0x13c   :  { %v4442_v41 = vrot.slane %v1052_v60, %v4310_v39  ;;  %v1055_v56 = vadd.f32 %v4285_v11, %v1034_v62  ;;  %v1012_v19 = vmax.f32 %v998_v16, 0.0  ;;  %v4451_v22 = vcombine.high %v4374_v53, %v4374_v53 }
 0x13d   :  { %v4447_v52 = vrot.slane %v1054_v14, %v4310_v39  ;;  %v4455_v12 = vcombine.high %v4387_v4, %v4387_v4  ;;  %v4458_v25 = vrot.slane %v1053_v7, %v4310_v39  ;;  %v1013_v26 = vmax.f32 %v999_v47, 0.0 }
 0x13e   :  { %v4461_v28 = vrot.slane %v1055_v56, %v4310_v39  ;;  %v1201_v29 = vsel %vm4359_vm1, %v4381_v50, %v1200_v48  ;;  %v1035_v57 = vmul.f32 %v4300_v9, %v1012_v19  ;;  %v1514_v34 = vcombine.low %v4374_v53, %v4451_v22 }
 0x13f   :  { %v1515_v36 = vcombine.low %v4387_v4, %v4455_v12  ;;  %v1204_v17 = vsel %vm4359_vm1, %v4395_v30, %v1203_v55  ;;  %v1036_v18 = vmul.f32 %v4280_v33, %v1013_v26  ;;  %v1280_v9 = vrot.slane %v1272_v54, %v4310_v39 }
 0x140   :  { %v1273_v37 = vcombine.low %v1201_v29, %v1204_v17  ;;  %v4485_v48 = vcombine.high %v4409_v23, %v4409_v23  ;;  %v1056_v50 = vadd.f32 %v4304_v13, %v1035_v57  ;;  %v1522_v46 = vrot.slane %v1514_v34, %v4310_v39 }
 0x141   :  { %v1529_v10 = vrot.slane %v1515_v36, %v4310_v39  ;;  %v4492_v30 = vcombine.high %v4413_v31, %v4413_v31  ;;  %v1057_v33 = vadd.f32 %v4285_v11, %v1036_v18  ;;  %v1205_v45 = vrot.slane %v1203_v55, 2 }
 0x142   :  { %v1287_v63 = vrot.slane %v1273_v37, %v4310_v39  ;;  %v1531_v43 = vcombine.low %v4409_v23, %v4485_v48  ;;  %v4501_v13 = vrot.slane %v1056_v50, %v4310_v39  ;;  %v1206_v58 = vrot.slane %v4451_v22, 7 }
 0x143   :  { %v1530_v54 = vcombine.low %v1522_v46, %v1529_v10  ;;  %v1532_v8 = vcombine.low %v4413_v31, %v4492_v30  ;;  %v4507_v1 = vrot.slane %v1057_v33, %v4310_v39  ;;  %v1209_v55 = vrot.slane %v4387_v4, 7 }
 0x144   :  { %v1288_v11 = vcombine.low %v1280_v9, %v1287_v63  ;;  %v1539_v38 = vrot.slane %v1531_v43, %v4310_v39  ;;  %v1207_v42 = vsel %vm4359_vm1, %v1205_v45, %v1206_v58  ;;  %v1208_v44 = vrot.slane %v1206_v58, 2 }
 0x145   :  { %3643 = vmatmul.mubr.msk.f32.gmra.mxu0 %vm1382_vm2, %v1530_v54  ;;  %v1546_v40 = vrot.slane %v1532_v8, %v4310_v39  ;;  %v1212_v27 = vrot.slane %v4455_v12, 7  ;;  %v1211_v59 = vrot.slane %v1209_v55, 2  ;;  %v1215_v15 = vrot.slane %v4409_v23, 7 }
 0x146   :  { %3617 = vmatmul.mubr.msk.f32.vlgmr.msra.gmra.mxu1 %vm1382_vm2, %v1288_v11  ;;  %3645 = vmatprep.mubr.msk.f32.mxu0 %vm3815_vm0, %v3814_v0  ;;  %v1138_v49 = vcombine.high %v4434_v51, %v4434_v51  ;;  %v1548_v3 = vcombine.low %v4431_v61, %v4434_v51  ;;  %v1210_v62 = vsel %vm4359_vm1, %v1208_v44, %v1209_v55  ;;  %v1218_v14 = vrot.slane %v4485_v48, 7 }
 0x147   :  { %3661 = vmatpush3.msra.mxu1 %v3373_v32  ;;  %3619 = vmatprep.mubr.msk.f32.mxu1 %vm3815_vm0, %v3814_v0  ;;  %v1547_v60 = vcombine.low %v1539_v38, %v1546_v40  ;;  %v1214_v2 = vrot.slane %v1212_v27, 2  ;;  %v1213_v16 = vsel %vm4359_vm1, %v1211_v59, %v1212_v27  ;;  %v1289_v7 = vcombine.low %v1207_v42, %v1210_v62 }
 0x148   :  { %v1234_v56 = vrot.slane %v1138_v49, 7  ;;  %v1549_v47 = vcombine.low %v1138_v49, %v4442_v41  ;;  %v1556_v26 = vrot.slane %v1548_v3, %v4310_v39  ;;  %v1217_v29 = vrot.slane %v1215_v15, 2 }
 0x149   :  { %3646 = vmatmul.mubr.msk.f32.gmra.mxu0 %vm1382_vm2, %v1547_v60  ;;  %v1216_v19 = vsel %vm4359_vm1, %v1214_v2, %v1215_v15  ;;  %v1220_v57 = vrot.slane %v1218_v14, 2  ;;  %v1297_v36 = vrot.slane %v1289_v7, %v4310_v39  ;;  %v1221_v18 = vrot.slane %v4413_v31, 7 }
 0x14a   :  { %v1290_v34 = vcombine.low %v1213_v16, %v1216_v19  ;;  %3648 = vmatprep.mubr.msk.f32.mxu0 %vm3815_vm0, %v3814_v0  ;;  %v1563_v17 = vrot.slane %v1549_v47, %v4310_v39  ;;  %v1219_v37 = vsel %vm4359_vm1, %v1217_v29, %v1218_v14  ;;  %v1224_v9 = vrot.slane %v4492_v30, 7 }
 0x14b   :  { %v1227_v50 = vrot.slane %v4431_v61, 7  ;;  %v4550_v46 = vcombine.high %v4442_v41, %v4442_v41  ;;  %v1222_v63 = vsel %vm4359_vm1, %v1220_v57, %v1221_v18  ;;  %v1223_v43 = vrot.slane %v1221_v18, 2 }
 0x14c   :  { %v1304_v10 = vrot.slane %v1290_v34, %v4310_v39  ;;  %v1564_v33 = vcombine.low %v1556_v26, %v1563_v17  ;;  %v1226_v45 = vrot.slane %v1224_v9, 2  ;;  %v1306_v54 = vcombine.low %v1219_v37, %v1222_v63 }
 0x14d   :  { %v4557_v8 = vcombine.high %v4458_v25, %v4458_v25  ;;  %v1565_v58 = vcombine.low %v4550_v46, %v4458_v25  ;;  %v1225_v32 = vsel %vm4359_vm1, %v1223_v43, %v1224_v9  ;;  %v1130_v38 = vcombine.high %v4431_v61, %v4431_v61 }
 0x14e   :  { %v1305_v11 = vcombine.low %v1297_v36, %v1304_v10  ;;  %3649 = vmatmul.mubr.msk.f32.gmra.mxu0 %vm1382_vm2, %v1564_v33  ;;  %v1229_v55 = vrot.slane %v1227_v50, 2  ;;  %v1228_v40 = vsel %vm4359_vm1, %v1226_v45, %v1227_v50  ;;  %v1314_v42 = vrot.slane %v1306_v54, %v4310_v39 }
 0x14f   :  { %3651 = vmatprep.mubr.msk.f32.mxu0 %vm3815_vm0, %v3814_v0  ;;  %v1566_v44 = vcombine.low %v4557_v8, %v4447_v52  ;;  %v1573_v27 = vrot.slane %v1565_v58, %v4310_v39  ;;  %v1307_v59 = vcombine.low %v1225_v32, %v1228_v40  ;;  %v1230_v15 = vrot.slane %v1130_v38, 7 }
 0x150   :  { %3620 = vmatmul.mubr.msk.f32.gmra.mxu1 %vm1382_vm2, %v1305_v11  ;;  %v3358_v49 = vrot.slane %v4434_v51, 9  ;;  %v1236_v3 = vrot.slane %v1234_v56, 2  ;;  %v1237_v62 = vrot.slane %v4442_v41, 7  ;;  %v1240_v2 = vrot.slane %v4550_v46, 7 }
 0x151   :  { %3622 = vmatprep.mubr.msk.f32.mxu1 %vm3815_vm0, %v3814_v0  ;;  %v1580_v60 = vrot.slane %v1566_v44, %v4310_v39  ;;  %v4583_v14 = vcombine.high %v4447_v52, %v4447_v52  ;;  %v1321_v16 = vrot.slane %v1307_v59, %v4310_v39  ;;  %v1231_v7 = vsel %vm4359_vm1, %v1229_v55, %v1230_v15 }
 0x152   :  { %v1235_v47 = vsel %vm4359_vm1, %v3358_v49, %v1234_v56  ;;  %v4592_v19 = vcombine.high %v4461_v28, %v4461_v28  ;;  %v1238_v29 = vsel %vm4359_vm1, %v1236_v3, %v1237_v62  ;;  %v1239_v57 = vrot.slane %v1237_v62, 2 }
 0x153   :  { %v1581_v26 = vcombine.low %v1573_v27, %v1580_v60  ;;  %v1323_v34 = vcombine.low %v1231_v7, %v1235_v47  ;;  %v1322_v36 = vcombine.low %v1314_v42, %v1321_v16  ;;  %v1582_v17 = vcombine.low %v4583_v14, %v4461_v28 }
 0x154   :  { %v1583_v18 = vcombine.low %v4592_v19, %v4501_v13  ;;  %v1242_v37 = vrot.slane %v1240_v2, 2  ;;  %v1241_v56 = vsel %vm4359_vm1, %v1239_v57, %v1240_v2  ;;  %v1243_v50 = vrot.slane %v4458_v25, 7 }
 0x155   :  { %3652 = vmatmul.mubr.msk.f32.gmra.mxu0 %vm1382_vm2, %v1581_v26  ;;  %v1331_v9 = vrot.slane %v1323_v34, %v4310_v39  ;;  %v1246_v10 = vrot.slane %v4557_v8, 7  ;;  %3623 = vmatmul.mubr.msk.f32.gmra.mxu1 %vm1382_vm2, %v1322_v36  ;;  %v1324_v33 = vcombine.low %v1238_v29, %v1241_v56  ;;  %v1590_v63 = vrot.slane %v1582_v17, %v4310_v39 }
 0x156   :  { %3654 = vmatprep.mubr.msk.f32.mxu0 %vm3815_vm0, %v3814_v0  ;;  %v1597_v43 = vrot.slane %v1583_v18, %v4310_v39  ;;  %v1249_v45 = vrot.slane %v4447_v52, 7  ;;  %3625 = vmatprep.mubr.msk.f32.mxu1 %vm3815_vm0, %v3814_v0  ;;  %v1244_v54 = vsel %vm4359_vm1, %v1242_v37, %v1243_v50  ;;  %v1245_v58 = vrot.slane %v1243_v50, 2 }
 0x157   :  { %v1248_v11 = vrot.slane %v1246_v10, 2  ;;  %v1252_v32 = vrot.slane %v4583_v14, 7  ;;  %v1338_v38 = vrot.slane %v1324_v33, %v4310_v39  ;;  %v4620_v42 = vcombine.high %v4501_v13, %v4501_v13 }
 0x158   :  { %v1598_v55 = vcombine.low %v1590_v63, %v1597_v43  ;;  %v1251_v40 = vrot.slane %v1249_v45, 2  ;;  %v1247_v44 = vsel %vm4359_vm1, %v1245_v58, %v1246_v10  ;;  %v1255_v15 = vrot.slane %v4461_v28, 7 }
 0x159   :  { %v1250_v27 = vsel %vm4359_vm1, %v1248_v11, %v1249_v45  ;;  %v1254_v59 = vrot.slane %v1252_v32, 2  ;;  %v1339_v49 = vcombine.low %v1331_v9, %v1338_v38  ;;  %v1340_v60 = vcombine.low %v1244_v54, %v1247_v44 }
 0x15a   :  { %3655 = vmatmul.mubr.msk.f32.gmra.mxu0 %vm1382_vm2, %v1598_v55  ;;  %v1253_v3 = vsel %vm4359_vm1, %v1251_v40, %v1252_v32  ;;  %v1599_v62 = vcombine.low %v4620_v42, %v4507_v1  ;;  %v1257_v7 = vrot.slane %v1255_v15, 2  ;;  %v1258_v47 = vrot.slane %v4592_v19, 7 }
 0x15b   :  { %v1341_v2 = vcombine.low %v1250_v27, %v1253_v3  ;;  %3657 = vmatprep.mubr.msk.f32.mxu0 %vm3815_vm0, %v3814_v0  ;;  %v1256_v16 = vsel %vm4359_vm1, %v1254_v59, %v1255_v15  ;;  %3626 = vmatmul.mubr.msk.f32.gmra.mxu1 %vm1382_vm2, %v1339_v49  ;;  %v1348_v26 = vrot.slane %v1340_v60, %v4310_v39  ;;  %v1261_v57 = vrot.slane %v4501_v13, 7 }
 0x15c   :  { %v1606_v29 = vrot.slane %v1599_v62, %v4310_v39  ;;  %v1264_v34 = vrot.slane %v4620_v42, 7  ;;  %3628 = vmatprep.mubr.msk.f32.mxu1 %vm3815_vm0, %v3814_v0  ;;  %v1259_v17 = vsel %vm4359_vm1, %v1257_v7, %v1258_v47  ;;  %v1260_v18 = vrot.slane %v1258_v47, 2 }
 0x15d   :  { %v1355_v36 = vrot.slane %v1341_v2, %v4310_v39  ;;  %v4649_v37 = vcombine.high %v4507_v1, %v4507_v1  ;;  %v1263_v56 = vrot.slane %v1261_v57, 2  ;;  %v1267_v50 = vrot.slane %v4507_v1, 7 }
 0x15e   :  { %3658 = vmatmul.mubr.msk.f32.gmra.mxu0 %vm1382_vm2, %v1606_v29  ;;  %v1266_v9 = vrot.slane %v1264_v34, 2  ;;  %v1262_v33 = vsel %vm4359_vm1, %v1260_v18, %v1261_v57  ;;  %v1357_v63 = vcombine.low %v1256_v16, %v1259_v17  ;;  %v1867_v40 = vcombine.low %v4367_v5, %v4374_v53  ;;  %v4747_v29 = vld [vmem:[%s5343_s5 + $0x28] sm:$0xff] }
 0x15f   :  { %v1356_v10 = vcombine.low %v1348_v26, %v1355_v36  ;;  %v1270_v43 = vrot.slane %v4649_v37, 7  ;;  %v1265_v45 = vsel %vm4359_vm1, %v1263_v56, %v1264_v34  ;;  %v1269_v54 = vrot.slane %v1267_v50, 2  ;;  %v2445_v26 = vld [vmem:[%s5343_s5 + $0x8] sm:$0xff] }
 0x160   :  { %v1358_v58 = vcombine.low %v1262_v33, %v1265_v45  ;;  %v1268_v11 = vsel %vm4359_vm1, %v1266_v9, %v1267_v50  ;;  %v1365_v38 = vrot.slane %v1357_v63, %v4310_v39  ;;  %v1866_v59 = vcombine.low %v4348_v6, %v4351_v21  ;;  %3696 = vmatprep.subr.mxu1 %v2445_v26 }
 0x161   :  { %3629 = vmatmul.mubr.msk.f32.gmra.mxu1 %vm1382_vm2, %v1356_v10  ;;  %v1271_v32 = vsel %vm4359_vm1, %v1269_v54, %v1270_v43  ;;  %v1881_v49 = vrot.slane %v1867_v40, %v4310_v39  ;;  %v1884_v3 = vcombine.low %v4455_v12, %v4409_v23  ;;  %v1883_v53 = vcombine.low %v4451_v22, %v4387_v4 }
 0x162   :  { %3631 = vmatprep.mubr.msk.f32.mxu1 %vm3815_vm0, %v3814_v0  ;;  %v1372_v55 = vrot.slane %v1358_v58, %v4310_v39  ;;  %v1374_v27 = vcombine.low %v1268_v11, %v1271_v32  ;;  %v1874_v5 = vrot.slane %v1866_v59, %v4310_v39  ;;  %v1901_v60 = vcombine.low %v4492_v30, %v4431_v61 }
 0x163   :  { %v1898_v21 = vrot.slane %v1884_v3, %v4310_v39  ;;  %v1891_v23 = vrot.slane %v1883_v53, %v4310_v39  ;;  %v1900_v12 = vcombine.low %v4485_v48, %v4413_v31  ;;  %v1918_v62 = vcombine.low %v4442_v41, %v4550_v46  ;;  %v3383_v3 = vld [vmem:[%s5342_s4 + $0x1] ss:$0 sm:$0xff] }
 0x164   :  { %v1373_v44 = vcombine.low %v1365_v38, %v1372_v55  ;;  %v1381_v15 = vrot.slane %v1374_v27, %v4310_v39  ;;  %v1882_v6 = vcombine.low %v1874_v5, %v1881_v49  ;;  %v1915_v22 = vrot.slane %v1901_v60, %v4310_v39  ;;  %v3384_v5 = vld [vmem:[%s5342_s4 + $0x2] ss:$0 sm:$0xff] }
 0x165   :  { %v1899_v4 = vcombine.low %v1891_v23, %v1898_v21  ;;  %v1908_v30 = vrot.slane %v1900_v12, %v4310_v39  ;;  %v3374_v2 = vcombine.high %v4431_v61, %v4434_v51  ;;  %v1932_v48 = vrot.slane %v1918_v62, %v4310_v39 }
 0x166   :  { %3632 = vmatmul.mubr.msk.f32.gmra.mxu1 %vm1382_vm2, %v1373_v44  ;;  %v1935_v16 = vcombine.low %v4447_v52, %v4583_v14  ;;  %v1934_v46 = vcombine.low %v4458_v25, %v4557_v8  ;;  %v1952_v7 = vcombine.low %v4501_v13, %v4620_v42  ;;  %v1951_v14 = vcombine.low %v4461_v28, %v4592_v19  ;;  %v3386_v19 = vld [vmem:[%s5343_s5 + $0x18] sm:$0xff] }
 0x167   :  { %3634 = vmatprep.mubr.msk.f32.mxu1 %vm3815_vm0, %v3814_v0  ;;  %v1916_v31 = vcombine.low %v1908_v30, %v1915_v22  ;;  %v1925_v41 = vrot.slane %v3374_v2, %v4310_v39  ;;  %v1968_v42 = vcombine.low %v4507_v1, %v4649_v37  ;;  %3683 = vmatprep.subr.mxu0 %v3386_v19  ;;  %v3385_v1 = vld [vmem:[%s5343_s5 + $0x10] sm:$0xff] }
 0x168   :  { %v1949_v51 = vrot.slane %v1935_v16, %v4310_v39  ;;  %v1942_v52 = vrot.slane %v1934_v46, %v4310_v39  ;;  %v1966_v8 = vrot.slane %v1952_v7, %v4310_v39  ;;  %v1959_v47 = vrot.slane %v1951_v14, %v4310_v39  ;;  %3684 = vmatpush3.msra.mxu0 %v3386_v19 }
 0x169   :  { %v1933_v61 = vcombine.low %v1925_v41, %v1932_v48  ;;  %v1975_v28 = vrot.slane %v1968_v42, %v4310_v39  ;;  %3685 = vmatprep.subr.mxu0 %v3385_v1  ;;  %v2345_v60 = vcombine.high %v3383_v3, %v3383_v3  ;;  %v2397_v23 = vcombine.high %v3384_v5, %v3384_v5 }
 0x16a   :  { %3635 = vmatmul.mubr.msk.f32.gmra.mxu1 %vm1382_vm2, %v1381_v15  ;;  %v1950_v25 = vcombine.low %v1942_v52, %v1949_v51  ;;  %v1967_v13 = vcombine.low %v1959_v47, %v1966_v8  ;;  %3686 = vmatpush3.msra.mxu0 %v3385_v1  ;;  %v3382_v15 = vld [vmem:[%s5342_s4] ss:$0 sm:$0xff]  ;;  %v4768_v48 = vrot.slane %v3383_v3, %v4310_v39 }
 0x16b   :  { %3662 = vmatprep.mubr.msk.f32.mxu1 %vm3815_vm0, %v3814_v0  ;;  %3709 = vmatprep.subr.mxu0 %v4747_v29  ;;  %v4762_v30 = vrot.slane %v3382_v15, %v4310_v39  ;;  %v4775_v7 = vrot.slane %v2345_v60, %v4310_v39  ;;  %v4778_v52 = vrot.slane %v2397_v23, %v4310_v39 }
 0x16e   :  { %3663 = vmatmul.mubr.msk.f32.vlgmr.msra.gmra.mxu1 %vm1382_vm2, %v1882_v6  ;;  %v2265_v6 = vcombine.high %v3382_v15, %v3382_v15 }
 0x16f   :  { %3665 = vmatprep.mubr.msk.f32.mxu1 %vm3815_vm0, %v3814_v0  ;;  %3697 = vmatpush3.msra.mxu1 %v2445_v26  ;;  %v4795_v26 = vcombine.high %v4768_v48, %v4768_v48 }
 0x172   :  { %3666 = vmatmul.mubr.msk.f32.gmra.mxu1 %vm1382_vm2, %v1899_v4 }
 0x173   :  { %3668 = vmatprep.mubr.msk.f32.mxu1 %vm3815_vm0, %v3814_v0 }
 0x176   :  { %3669 = vmatmul.mubr.msk.f32.gmra.mxu1 %vm1382_vm2, %v1916_v31  ;;  %v4765_v31 = vrot.slane %v2265_v6, %v4310_v39 }
 0x177   :  { %3671 = vmatprep.mubr.msk.f32.mxu1 %vm3815_vm0, %v3814_v0 }
 0x178   :  { %v4791_v19 = vcombine.high %v4765_v31, %v4765_v31 }
 0x17a   :  { %3672 = vmatmul.mubr.msk.f32.gmra.mxu1 %vm1382_vm2, %v1933_v61  ;;  %v4771_v61 = vrot.slane %v3384_v5, %v4310_v39 }
 0x17b   :  { %3674 = vmatprep.mubr.msk.f32.mxu1 %vm3815_vm0, %v3814_v0 }
 0x17e   :  { %3675 = vmatmul.mubr.msk.f32.gmra.mxu1 %vm1382_vm2, %v1950_v25 }
 0x17f   :  { %3677 = vmatprep.mubr.msk.f32.mxu1 %vm3815_vm0, %v3814_v0 }
 0x182   :  { %3678 = vmatmul.mubr.msk.f32.gmra.mxu1 %vm1382_vm2, %v1967_v13  ;;  %v4783_v13 = vcombine.high %v4762_v30, %v4762_v30 }
 0x183   :  { %3680 = vmatprep.mubr.msk.f32.mxu1 %vm3815_vm0, %v3814_v0  ;;  %v2444_v0 = vld [vmem:[%s5343_s5] sm:$0xff]  ;;  %vm2651_vm0 = vcmask 130048  }
 0x184   :  { %3698 = vmatprep.subr.mxu1 %v2444_v0 }
 0x185   :  { %3699 = vmatpush3.msra.mxu1 %v2444_v0 }
 0x186   :  { %3681 = vmatmul.mubr.msk.f32.gmra.mxu1 %vm1382_vm2, %v1975_v28 }
 0x1f9   :  { %v1687_v57 = vpop.f32.mrf.mxu0 }
 0x1fb   :  { %v3641_v34 = vpop.f32.mrf.mxu0 }
 0x205   :  { %v1692_v36 = vpop.f32.mrf.mxu0 }
 0x206   :  { %v1463_v17 = vpop.f32.mrf.mxu1 }
 0x207   :  { %v1688_v18 = vadd.f32 %v1687_v57, %v1463_v17  ;;  %v3644_v37 = vpop.f32.mrf.mxu0 }
 0x208   :  { %v3618_v56 = vpop.f32.mrf.mxu1  ;;  %v4812_v37 = vcombine.high %v4775_v7, %v4775_v7 }
 0x209   :  { %v1697_v9 = vpop.f32.mrf.mxu0  ;;  %v1728_v12 = vcombine.high %v1688_v18, %v1688_v18  ;;  %v1735_v51 = vrot.slane %v1688_v18, %v4310_v39  ;;  %v4816_v56 = vcombine.high %v4778_v52, %v4778_v52 }
 0x20b   :  { %v3647_v50 = vpop.f32.mrf.mxu0  ;;  %v1742_v14 = vrot.slane %v1728_v12, %v4310_v39  ;;  %v1743_v17 = vcombine.high %v1735_v51, %v1735_v51 }
 0x20e   :  { %v1702_v10 = vpop.f32.mrf.mxu0 }
 0x210   :  { %v1468_v33 = vpop.f32.mrf.mxu1  ;;  %v3650_v63 = vpop.f32.mrf.mxu0 }
 0x211   :  { %v1693_v53 = vadd.f32 %v1692_v36, %v1468_v33  ;;  %v4805_v36 = vcombine.high %v4771_v61, %v4771_v61 }
 0x212   :  { %v3621_v43 = vpop.f32.mrf.mxu1 }
 0x213   :  { %v1745_v2 = vcombine.high %v1693_v53, %v1693_v53  ;;  %v1752_v42 = vrot.slane %v1693_v53, %v4310_v39 }
 0x215   :  { %v1707_v45 = vpop.f32.mrf.mxu0  ;;  %v1473_v54 = vpop.f32.mrf.mxu1  ;;  %v4787_v28 = vrot.slane %v1745_v2, %v4310_v39  ;;  %v1760_v43 = vcombine.high %v1752_v42, %v1752_v42 }
 0x216   :  { %v1698_v21 = vadd.f32 %v1697_v9, %v1473_v54  ;;  %v1744_v9 = vcombine.high %v1742_v14, %v1742_v14 }
 0x217   :  { %v3653_v58 = vpop.f32.mrf.mxu0  ;;  %v3624_v11 = vpop.f32.mrf.mxu1 }
 0x218   :  { %v1762_v16 = vcombine.high %v1698_v21, %v1698_v21  ;;  %v4798_v0 = vrot.slane %v1698_v21, %v4310_v39 }
 0x21a   :  { %v1712_v32 = vpop.f32.mrf.mxu0  ;;  %v4801_v1 = vrot.slane %v1762_v16, %v4310_v39  ;;  %v1777_v11 = vcombine.high %v4798_v0, %v4798_v0 }
 0x21b   :  { %v1478_v38 = vpop.f32.mrf.mxu1 }
 0x21c   :  { %v3656_v55 = vpop.f32.mrf.mxu0  ;;  %v1703_v4 = vadd.f32 %v1702_v10, %v1478_v38 }
 0x21d   :  { %v3627_v40 = vpop.f32.mrf.mxu1 }
 0x21e   :  { %v4750_v44 = vpop.f32.mrf.mxu0  ;;  %v1779_v25 = vcombine.high %v1703_v4, %v1703_v4  ;;  %v4808_v18 = vrot.slane %v1703_v4, %v4310_v39 }
 0x220   :  { %v3659_v27 = vpop.f32.mrf.mxu0  ;;  %v4819_v50 = vrot.slane %v1779_v25, %v4310_v39 }
 0x221   :  { %v1483_v59 = vpop.f32.mrf.mxu1  ;;  %v1794_v27 = vcombine.high %v4808_v18, %v4808_v18 }
 0x222   :  { %v1708_v22 = vadd.f32 %v1707_v45, %v1483_v59  ;;  %v1761_v45 = vcombine.high %v4787_v28, %v4787_v28  ;;  %v1795_v3 = vcombine.high %v4819_v50, %v4819_v50 }
 0x223   :  { %v3630_v49 = vpop.f32.mrf.mxu1 }
 0x224   :  { %v1796_v8 = vcombine.high %v1708_v22, %v1708_v22  ;;  %v4822_v10 = vrot.slane %v1708_v22, %v4310_v39 }
 0x226   :  { %v1488_v62 = vpop.f32.mrf.mxu1  ;;  %v4825_v33 = vrot.slane %v1796_v8, %v4310_v39  ;;  %v1811_v5 = vcombine.high %v4822_v10, %v4822_v10 }
 0x227   :  { %v1713_v41 = vadd.f32 %v1712_v32, %v1488_v62  ;;  %v1778_v32 = vcombine.high %v4801_v1, %v4801_v1 }
 0x228   :  { %v3633_v46 = vpop.f32.mrf.mxu1  ;;  %v1812_v53 = vcombine.high %v4825_v33, %v4825_v33 }
 0x229   :  { %v1813_v57 = vcombine.high %v1713_v41, %v1713_v41  ;;  %v4835_v38 = vrot.slane %v1713_v41, %v4310_v39 }
 0x22a   :  { %v1493_v47 = vpop.f32.mrf.mxu1 }
 0x22b   :  { %v4838_v55 = vrot.slane %v1813_v57, %v4310_v39  ;;  %v1718_v6 = vadd.f32 %v4750_v44, %v1493_v47  ;;  %v1828_v22 = vcombine.high %v4835_v38, %v4835_v38 }
 0x22c   :  { %v3636_v34 = vpop.f32.mrf.mxu1 }
 0x22e   :  { %v2056_v63 = vpop.f32.mrf.mxu1 }
 0x22f   :  { %v2097_v54 = vcombine.high %v2056_v63, %v2056_v63  ;;  %v2104_v58 = vrot.slane %v2056_v63, %v4310_v39 }
 0x230   :  { %v3664_v40 = vpop.f32.mrf.mxu1 }
 0x231   :  { %v2111_v59 = vrot.slane %v2097_v54, %v4310_v39  ;;  %v2112_v15 = vcombine.high %v2104_v58, %v2104_v58  ;;  %v2233_v49 = vadd.f32 %v2104_v58, %v1735_v51 }
 0x232   :  { %v2061_v21 = vpop.f32.mrf.mxu1 }
 0x233   :  { %v2113_v60 = vcombine.high %v2111_v59, %v2111_v59  ;;  %v2234_v23 = vadd.f32 %v2112_v15, %v1743_v17  ;;  %v2235_v12 = vadd.f32 %v2111_v59, %v1742_v14  ;;  %v2286_v4 = vadd.f32 %v4762_v30, %v2233_v49 }
 0x234   :  { %v2114_v2 = vcombine.high %v2061_v21, %v2061_v21  ;;  %v2121_v16 = vrot.slane %v2061_v21, %v4310_v39  ;;  %v3667_v41 = vpop.f32.mrf.mxu1  ;;  %v4859_v14 = vrot.slane %v1718_v6, %v4310_v39 }
 0x235   :  { %v2236_v46 = vadd.f32 %v2113_v60, %v1744_v9  ;;  %v2287_v51 = vadd.f32 %v4783_v13, %v2234_v23  ;;  %v2288_v44 = vadd.f32 %v4765_v31, %v2235_v12  ;;  %v2312_v25 = vmax.f32 %v2286_v4, 0.0 }
 0x236   :  { %v2128_v8 = vrot.slane %v2114_v2, %v4310_v39  ;;  %v2129_v47 = vcombine.high %v2121_v16, %v2121_v16  ;;  %v2237_v57 = vadd.f32 %v2121_v16, %v1752_v42  ;;  %v2066_v34 = vpop.f32.mrf.mxu1 }
 0x237   :  { %v2289_v17 = vadd.f32 %v4791_v19, %v2236_v46  ;;  %v2313_v63 = vmax.f32 %v2287_v51, 0.0  ;;  %v2314_v54 = vmax.f32 %v2288_v44, 0.0  ;;  %v2366_v58 = vmul.f32 %v4768_v48, %v2312_v25 }
 0x238   :  { %v2130_v9 = vcombine.high %v2128_v8, %v2128_v8  ;;  %v2238_v40 = vadd.f32 %v2129_v47, %v1760_v43  ;;  %v2239_v59 = vadd.f32 %v2128_v8, %v4787_v28  ;;  %v2290_v15 = vadd.f32 %v4762_v30, %v2237_v57  ;;  %v3670_v49 = vpop.f32.mrf.mxu1 }
 0x239   :  { %v2315_v6 = vmax.f32 %v2289_v17, 0.0  ;;  %v2367_v21 = vmul.f32 %v4795_v26, %v2313_v63  ;;  %v2368_v60 = vmul.f32 %v4775_v7, %v2314_v54  ;;  %v4869_v42 = vadd.f32 %v4771_v61, %v2366_v58 }
 0x23a   :  { %v2240_v23 = vadd.f32 %v2130_v9, %v1761_v45  ;;  %v2291_v12 = vadd.f32 %v4783_v13, %v2238_v40  ;;  %v2292_v4 = vadd.f32 %v4765_v31, %v2239_v59  ;;  %v2316_v2 = vmax.f32 %v2290_v15, 0.0  ;;  %v2071_v43 = vpop.f32.mrf.mxu1 }
 0x23b   :  { %v2369_v16 = vmul.f32 %v4812_v37, %v2315_v6  ;;  %v4877_v41 = vadd.f32 %v4805_v36, %v2367_v21  ;;  %v4880_v46 = vadd.f32 %v4778_v52, %v2368_v60  ;;  %v2131_v63 = vcombine.high %v2066_v34, %v2066_v34 }
 0x23c   :  { %v2293_v51 = vadd.f32 %v4791_v19, %v2240_v23  ;;  %v2317_v45 = vmax.f32 %v2291_v12, 0.0  ;;  %v2318_v44 = vmax.f32 %v2292_v4, 0.0  ;;  %v2370_v25 = vmul.f32 %v4768_v48, %v2316_v2  ;;  %v3673_v8 = vpop.f32.mrf.mxu1 }
 0x23d   :  { %v4885_v47 = vadd.f32 %v4816_v56, %v2369_v16  ;;  %v2138_v49 = vrot.slane %v2066_v34, %v4310_v39  ;;  %v2145_v6 = vrot.slane %v2131_v63, %v4310_v39  ;;  %v2148_v21 = vcombine.high %v2071_v43, %v2071_v43 }
 0x23e   :  { %v2319_v54 = vmax.f32 %v2293_v51, 0.0  ;;  %v2371_v58 = vmul.f32 %v4795_v26, %v2317_v45  ;;  %v2372_v9 = vmul.f32 %v4775_v7, %v2318_v44  ;;  %v4892_v40 = vadd.f32 %v4771_v61, %v2370_v25  ;;  %v4894_v59 = vpop.f32.mrf.mxu1 }
 0x23f   :  { %v2146_v16 = vcombine.high %v2138_v49, %v2138_v49  ;;  %v2147_v51 = vcombine.high %v2145_v6, %v2145_v6  ;;  %v2241_v45 = vadd.f32 %v2138_v49, %v4798_v0  ;;  %v2243_v34 = vadd.f32 %v2145_v6, %v4801_v1 }
 0x240   :  { %v2373_v60 = vmul.f32 %v4812_v37, %v2319_v54  ;;  %v4901_v23 = vadd.f32 %v4805_v36, %v2371_v58  ;;  %v4904_v12 = vadd.f32 %v4778_v52, %v2372_v9  ;;  %v5348_v4 = vrot.slane %v4892_v40, 7  ;;  %v3676_v2 = vpop.f32.mrf.mxu1 }
 0x241   :  { %v2242_v9 = vadd.f32 %v2146_v16, %v1777_v11  ;;  %v2244_v49 = vadd.f32 %v2147_v51, %v1778_v32  ;;  %v2155_v6 = vrot.slane %v2071_v43, %v4310_v39  ;;  %v2294_v1 = vadd.f32 %v4762_v30, %v2241_v45 }
 0x242   :  { %v2425_v44 = vadd.f32 %v4816_v56, %v2373_v60  ;;  %v2488_v25 = vrot.slane %v5348_v4, 2  ;;  %v2489_v8 = vrot.slane %v4901_v23, 7  ;;  %v2492_v63 = vrot.slane %v4904_v12, 7  ;;  %v4914_v54 = vpop.f32.mrf.mxu1 }
 0x243   :  { %v2776_v58 = vcombine.low %v4892_v40, %v4901_v23  ;;  %v2295_v16 = vadd.f32 %v4783_v13, %v2242_v9  ;;  %v2163_v57 = vcombine.high %v2155_v6, %v2155_v6  ;;  %v2245_v62 = vadd.f32 %v2155_v6, %v4808_v18 }
 0x244   :  { %v2491_v60 = vrot.slane %v2489_v8, 2  ;;  %v2494_v2 = vrot.slane %v2492_v63, 2  ;;  %v2495_v24 = vrot.slane %v2425_v44, 7  ;;  %v3679_v28 = vpop.f32.mrf.mxu1  ;;  %v4929_v15 = vsel %vm4359_vm1, %v2488_v25, %v2489_v8 }
 0x245   :  { %v2777_v0 = vcombine.low %v4904_v12, %v2425_v44  ;;  %v4933_v11 = vrot.slane %v2776_v58, %v4310_v39  ;;  %v2296_v28 = vadd.f32 %v4765_v31, %v2243_v34  ;;  %v2297_v8 = vadd.f32 %v4791_v19, %v2244_v49 }
 0x246   :  { %v4938_v32 = vsel %vm4359_vm1, %v2491_v60, %v2492_v63  ;;  %v2497_v43 = vrot.slane %v2495_v24, 2  ;;  %v4942_v51 = vpop.f32.mrf.mxu1  ;;  %v2320_v58 = vmax.f32 %v2294_v1, 0.0  ;;  %v4950_v45 = vsel %vm4359_vm1, %v2494_v2, %v2495_v24 }
 0x247   :  { %v4945_v25 = vrot.slane %v2777_v0, %v4310_v39  ;;  %v2321_v4 = vmax.f32 %v2295_v16, 0.0  ;;  %v2322_v63 = vmax.f32 %v2296_v28, 0.0  ;;  %v2162_v60 = vrot.slane %v2148_v21, %v4310_v39 }
 0x248   :  { %v3682_v9 = vpop.f32.mrf.mxu1  ;;  %v2323_v17 = vmax.f32 %v2297_v8, 0.0  ;;  %v2374_v34 = vmul.f32 %v4768_v48, %v2320_v58  ;;  %v2165_v0 = vcombine.high %v4894_v59, %v4894_v59  ;;  %v2246_v2 = vadd.f32 %v2163_v57, %v1794_v27 }
 0x249   :  { %v2375_v49 = vmul.f32 %v4795_v26, %v2321_v4  ;;  %v2376_v1 = vmul.f32 %v4775_v7, %v2322_v63  ;;  %v2164_v24 = vcombine.high %v2162_v60, %v2162_v60  ;;  %v2247_v28 = vadd.f32 %v2162_v60, %v4819_v50 }
 0x24a   :  { %v2377_v21 = vmul.f32 %v4812_v37, %v2323_v17  ;;  %v4964_v16 = vadd.f32 %v4771_v61, %v2374_v34  ;;  %v2298_v6 = vadd.f32 %v4762_v30, %v2245_v62  ;;  %v2299_v27 = vadd.f32 %v4762_v30, %v2246_v2 }
 0x24b   :  { %v4969_v8 = vadd.f32 %v4805_v36, %v2375_v49  ;;  %v4972_v4 = vadd.f32 %v4778_v52, %v2376_v1  ;;  %v2248_v18 = vadd.f32 %v2164_v24, %v1795_v3  ;;  %v2300_v62 = vadd.f32 %v4783_v13, %v2247_v28 }
 0x24c   :  { %v4979_v57 = vadd.f32 %v4816_v56, %v2377_v21  ;;  %v2498_v17 = vrot.slane %v4964_v16, 7  ;;  %v2989_v58 = vcombine.low %v2425_v44, %v4964_v16  ;;  %v2324_v34 = vmax.f32 %v2298_v6, 0.0 }
 0x24d   :  { %v2301_v9 = vadd.f32 %v4765_v31, %v2248_v18  ;;  %v2325_v1 = vmax.f32 %v2299_v27, 0.0  ;;  %v2326_v24 = vmax.f32 %v2300_v62, 0.0  ;;  %v2172_v6 = vrot.slane %v4894_v59, %v4310_v39 }
 0x24e   :  { %v4989_v50 = vsel %vm4359_vm1, %v2497_v43, %v2498_v17  ;;  %v4991_v3 = vrot.slane %v2498_v17, 2  ;;  %v4994_v49 = vrot.slane %v2989_v58, %v4310_v39  ;;  %v2378_v21 = vmul.f32 %v4768_v48, %v2324_v34 }
 0x24f   :  { %v2327_v2 = vmax.f32 %v2301_v9, 0.0  ;;  %v2379_v28 = vmul.f32 %v4768_v48, %v2325_v1  ;;  %v2179_v43 = vrot.slane %v2165_v0, %v4310_v39  ;;  %v2182_v18 = vcombine.high %v4914_v54, %v4914_v54 }
 0x250   :  { %v2380_v17 = vmul.f32 %v4795_v26, %v2326_v24  ;;  %v5008_v58 = vadd.f32 %v4771_v61, %v2378_v21  ;;  %v2189_v62 = vrot.slane %v4914_v54, %v4310_v39  ;;  %v2180_v34 = vcombine.high %v2172_v6, %v2172_v6 }
 0x251   :  { %v2381_v27 = vmul.f32 %v4775_v7, %v2327_v2  ;;  %v5013_v9 = vadd.f32 %v4771_v61, %v2379_v28  ;;  %v2181_v59 = vcombine.high %v2179_v43, %v2179_v43  ;;  %v2249_v0 = vadd.f32 %v2172_v6, %v4822_v10 }
 0x252   :  { %v5017_v1 = vadd.f32 %v4805_v36, %v2380_v17  ;;  %v2251_v21 = vadd.f32 %v2179_v43, %v4825_v33  ;;  %v2250_v54 = vadd.f32 %v2180_v34, %v1811_v5  ;;  %v2196_v2 = vrot.slane %v2182_v18, %v4310_v39 }
 0x253   :  { %v5020_v24 = vadd.f32 %v4778_v52, %v2381_v27  ;;  %v2252_v28 = vadd.f32 %v2181_v59, %v1812_v53  ;;  %v2302_v6 = vadd.f32 %v4791_v19, %v2249_v0  ;;  %v2197_v63 = vcombine.high %v2189_v62, %v2189_v62 }
 0x254   :  { %v2514_v17 = vrot.slane %v5017_v1, 7  ;;  %v2304_v27 = vadd.f32 %v4783_v13, %v2251_v21  ;;  %v2303_v43 = vadd.f32 %v4762_v30, %v2250_v54  ;;  %v2253_v10 = vadd.f32 %v2189_v62, %v4835_v38 }
 0x255   :  { %v2305_v60 = vadd.f32 %v4765_v31, %v2252_v28  ;;  %v2328_v44 = vmax.f32 %v2302_v6, 0.0  ;;  %v2198_v34 = vcombine.high %v2196_v2, %v2196_v2  ;;  %v2254_v33 = vadd.f32 %v2197_v63, %v1828_v22 }
 0x256   :  { %v2330_v5 = vmax.f32 %v2304_v27, 0.0  ;;  %v2255_v53 = vadd.f32 %v2196_v2, %v4838_v55  ;;  %v2329_v59 = vmax.f32 %v2303_v43, 0.0  ;;  %v2306_v21 = vadd.f32 %v4791_v19, %v2253_v10 }
 0x257   :  { %v2331_v0 = vmax.f32 %v2305_v60, 0.0  ;;  %v2382_v18 = vmul.f32 %v4812_v37, %v2328_v44  ;;  %v5360_v28 = vcombine.high %v4838_v55, %v4838_v55  ;;  %v2307_v6 = vadd.f32 %v4762_v30, %v2254_v33 }
 0x258   :  { %v2384_v54 = vmul.f32 %v4795_v26, %v2330_v5  ;;  %v2308_v27 = vadd.f32 %v4783_v13, %v2255_v53  ;;  %v2383_v38 = vmul.f32 %v4768_v48, %v2329_v59  ;;  %v2332_v60 = vmax.f32 %v2306_v21, 0.0 }
 0x259   :  { %v2256_v62 = vadd.f32 %v2198_v34, %v5360_v28  ;;  %v2385_v22 = vmul.f32 %v4775_v7, %v2331_v0  ;;  %v5053_v63 = vadd.f32 %v4816_v56, %v2382_v18  ;;  %v2333_v55 = vmax.f32 %v2307_v6, 0.0 }
 0x25a   :  { %v5056_v44 = vadd.f32 %v4805_v36, %v2384_v54  ;;  %v2334_v43 = vmax.f32 %v2308_v27, 0.0  ;;  %v5060_v10 = vadd.f32 %v4771_v61, %v2383_v38  ;;  %v2386_v34 = vmul.f32 %v4812_v37, %v2332_v60 }
 0x25b   :  { %v2309_v2 = vadd.f32 %v4765_v31, %v2256_v62  ;;  %v5063_v13 = vadd.f32 %v4778_v52, %v2385_v22  ;;  %v2520_v5 = vrot.slane %v5053_v63, 7  ;;  %v2387_v59 = vmul.f32 %v4768_v48, %v2333_v55 }
 0x25c   :  { %v2526_v33 = vrot.slane %v5056_v44, 7  ;;  %v2388_v0 = vmul.f32 %v4795_v26, %v2334_v43  ;;  %v2523_v18 = vrot.slane %v5060_v10, 7  ;;  %v5076_v21 = vadd.f32 %v4816_v56, %v2386_v34 }
 0x25d   :  { %v2335_v53 = vmax.f32 %v2309_v2, 0.0  ;;  %v5072_v31 = vrot.slane %v2520_v5, 2  ;;  %v2759_v54 = vcombine.low %v4869_v42, %v4877_v41  ;;  %v5082_v62 = vadd.f32 %v4771_v61, %v2387_v59 }
 0x25e   :  { %v5085_v6 = vadd.f32 %v4805_v36, %v2388_v0  ;;  %v2760_v26 = vcombine.low %v4880_v46, %v4885_v47  ;;  %v5349_v27 = vrot.slane %v5076_v21, 7  ;;  %v2205_v22 = vrot.slane %v4942_v51, %v4310_v39 }
 0x25f   :  { %v2389_v28 = vmul.f32 %v4775_v7, %v2335_v53  ;;  %v2767_v38 = vrot.slane %v2759_v54, %v4310_v39  ;;  %v2792_v60 = vcombine.low %v4933_v11, %v4945_v25  ;;  %v2535_v2 = vrot.slane %v5082_v62, 7 }
 0x260   :  { %v2774_v55 = vrot.slane %v2760_v26, %v4310_v39  ;;  %v5103_v43 = vrot.slane %v5349_v27, 2  ;;  %v2206_v34 = vcombine.high %v2205_v22, %v2205_v22  ;;  %v2257_v53 = vadd.f32 %v2205_v22, %v4859_v14 }
 0x261   :  { %v5096_v7 = vadd.f32 %v4778_v52, %v2389_v28  ;;  %v5361_v51 = vrot.slane %v4877_v41, 7  ;;  %v5362_v11 = vrot.slane %v4869_v42, 9  ;;  %v5364_v54 = vrot.slane %v4880_v46, 7 }
 0x262   :  { %v2775_v25 = vcombine.low %v2767_v38, %v2774_v55  ;;  %v2483_v26 = vrot.slane %v4885_v47, 7  ;;  %v5365_v27 = vcombine.high %v4859_v14, %v4859_v14  ;;  %v2310_v36 = vadd.f32 %v4791_v19, %v2257_v53 }
 0x263   :  { %v2478_v52 = vsel %vm4359_vm1, %v5362_v11, %v5361_v51  ;;  %v5363_v59 = vmov %v5361_v51  ;;  %v2482_v28 = vrot.slane %v5364_v54, 2  ;;  %v2793_v42 = vcombine.low %v4964_v16, %v4969_v8 }
 0x264   :  { %v2479_v0 = vrot.slane %v5363_v59, 2  ;;  %v2258_v22 = vadd.f32 %v2206_v34, %v5365_v27  ;;  %v2794_v38 = vcombine.low %v4972_v4, %v4979_v57  ;;  %3700 = vmatprep.mubr.msk.f32.mxu1 %vm2651_vm0, %v2775_v25  ;;  %v5366_v55 = vmov %v5364_v54 }
 0x265   :  { %v2484_v11 = vsel %vm4359_vm1, %v2482_v28, %v2483_v26  ;;  %v2485_v14 = vrot.slane %v2483_v26, 2  ;;  %v2566_v19 = vcombine.low %v4929_v15, %v4938_v32  ;;  %v2336_v16 = vmax.f32 %v2310_v36, 0.0  ;;  %3701 = vmatmul.mubr.msk.f32.vlgmr.msra.gmra.mxu1 %vm2651_vm0, %v2792_v60 }
 0x266   :  { %v2481_v51 = vsel %vm4359_vm1, %v2479_v0, %v5366_v55  ;;  %v2311_v27 = vadd.f32 %v4762_v30, %v2258_v22  ;;  %v2801_v53 = vrot.slane %v2793_v42, %v4310_v39  ;;  %v5367_v25 = vrot.slane %v4892_v40, 7 }
 0x267   :  { %v2549_v34 = vcombine.low %v2478_v52, %v2481_v51  ;;  %v2808_v0 = vrot.slane %v2794_v38, %v4310_v39  ;;  %v2574_v54 = vrot.slane %v2566_v19, %v4310_v39  ;;  %v5368_v15 = vcombine.low %v4950_v45, %v4989_v50 }
 0x268   :  { %v2487_v59 = vsel %vm4359_vm1, %v2485_v14, %v5367_v25  ;;  %v2337_v32 = vmax.f32 %v2311_v27, 0.0  ;;  %v2390_v60 = vmul.f32 %v4812_v37, %v2336_v16  ;;  %v2810_v22 = vcombine.low %v5013_v9, %v5017_v1 }
 0x269   :  { %v2581_v30 = vrot.slane %v5368_v15, %v4310_v39  ;;  %v2550_v36 = vcombine.low %v2484_v11, %v2487_v59  ;;  %v2557_v52 = vrot.slane %v2549_v34, %v4310_v39  ;;  %v2809_v28 = vcombine.low %v2801_v53, %v2808_v0 }
 0x26a   :  { %v2811_v42 = vcombine.low %v5020_v24, %v5053_v63  ;;  %v2391_v38 = vmul.f32 %v4768_v48, %v2337_v32  ;;  %v5155_v55 = vadd.f32 %v4816_v56, %v2390_v60  ;;  %v5369_v37 = vrot.slane %v4969_v8, 7  ;;  %v3401_v60 = vld [vmem:[%s5343_s5 + $0x20] sm:$0xff] }
 0x26b   :  { %v2582_v26 = vcombine.low %v2574_v54, %v2581_v30  ;;  %v2564_v45 = vrot.slane %v2550_v36, %v4310_v39  ;;  %3703 = vmatprep.mubr.msk.f32.mxu1 %vm2651_vm0, %v2809_v28  ;;  %v2818_v51 = vrot.slane %v2810_v22, %v4310_v39  ;;  %v5371_v56 = vrot.slane %v4972_v4, 7 }
 0x26c   :  { %v2502_v50 = vsel %vm4359_vm1, %v4991_v3, %v5369_v37  ;;  %v2825_v11 = vrot.slane %v2811_v42, %v4310_v39  ;;  %v5370_v14 = vmov %v5369_v37  ;;  %v5171_v27 = vadd.f32 %v4771_v61, %v2391_v38 }
 0x26d   :  { %v2503_v48 = vrot.slane %v5370_v14, 2  ;;  %v2506_v19 = vrot.slane %v5371_v56, 2  ;;  %v2544_v16 = vrot.slane %v5155_v55, 7  ;;  %v2565_v34 = vcombine.low %v2557_v52, %v2564_v45 }
 0x26e   :  { %v2507_v3 = vrot.slane %v4979_v57, 7  ;;  %v2826_v53 = vcombine.low %v2818_v51, %v2825_v11  ;;  %v5372_v25 = vmov %v5371_v56  ;;  %v2827_v0 = vcombine.low %v5060_v10, %v5056_v44 }
 0x26f   :  { %v2505_v59 = vsel %vm4359_vm1, %v2503_v48, %v5372_v25  ;;  %v2828_v54 = vcombine.low %v5063_v13, %v5076_v21  ;;  %v2546_v61 = vrot.slane %v2544_v16, 2  ;;  %v2547_v15 = vrot.slane %v5171_v27, 7  ;;  %3687 = vmatprep.mubr.msk.f32.mxu0 %vm2651_vm0, %v2565_v34 }
 0x270   :  { %v2508_v30 = vsel %vm4359_vm1, %v2506_v19, %v2507_v3  ;;  %v2509_v32 = vrot.slane %v2507_v3, 2  ;;  %3688 = vmatmul.mubr.msk.f32.vlgmr.msra.gmra.mxu0 %vm2651_vm0, %v2582_v26  ;;  %3704 = vmatmul.mubr.msk.f32.gmra.mxu1 %vm2651_vm0, %v2826_v53  ;;  %v2583_v36 = vcombine.low %v2502_v50, %v2505_v59  ;;  %v2835_v52 = vrot.slane %v2827_v0, %v4310_v39 }
 0x271   :  { %v2842_v28 = vrot.slane %v2828_v54, %v4310_v39  ;;  %v2516_v22 = vrot.slane %v2514_v17, 2  ;;  %v5373_v42 = vrot.slane %v5008_v58, 7  ;;  %v5374_v45 = vrot.slane %v5013_v9, 9  ;;  %3710 = vmatpush3.msra.mxu0 %v4747_v29 }
 0x272   :  { %v2517_v37 = vrot.slane %v5020_v24, 7  ;;  %v2524_v50 = vsel %vm4359_vm1, %v5072_v31, %v2523_v18  ;;  %v2591_v11 = vrot.slane %v2583_v36, %v4310_v39  ;;  %v2844_v9 = vcombine.low %v5082_v62, %v5085_v6  ;;  %3711 = vmatprep.subr.mxu0 %v3401_v60 }
 0x273   :  { %v2511_v38 = vsel %vm4359_vm1, %v2509_v32, %v5373_v42  ;;  %v2515_v26 = vsel %vm4359_vm1, %v5374_v45, %v2514_v17  ;;  %v2843_v14 = vcombine.low %v2835_v52, %v2842_v28  ;;  %v2845_v56 = vcombine.low %v5096_v7, %v5155_v55  ;;  %3712 = vmatpush3.msra.mxu0 %v3401_v60 }
 0x274   :  { %v2584_v51 = vcombine.low %v2508_v30, %v2511_v38  ;;  %v2518_v17 = vsel %vm4359_vm1, %v2516_v22, %v2517_v37  ;;  %v2519_v48 = vrot.slane %v2517_v37, 2  ;;  %v2525_v31 = vrot.slane %v2523_v18, 2 }
 0x275   :  { %3706 = vmatprep.mubr.msk.f32.mxu1 %vm2651_vm0, %v2843_v14  ;;  %v2600_v19 = vcombine.low %v2515_v26, %v2518_v17  ;;  %v2852_v34 = vrot.slane %v2844_v9, %v4310_v39  ;;  %v2528_v3 = vrot.slane %v2526_v33, 2  ;;  %v2859_v25 = vrot.slane %v2845_v56, %v4310_v39 }
 0x276   :  { %v2598_v29 = vrot.slane %v2584_v51, %v4310_v39  ;;  %v2521_v53 = vsel %vm4359_vm1, %v2519_v48, %v2520_v5  ;;  %v2527_v18 = vsel %vm4359_vm1, %v2525_v31, %v2526_v33  ;;  %v2529_v59 = vrot.slane %v5063_v13, 7 }
 0x277   :  { %v2601_v54 = vcombine.low %v2521_v53, %v2524_v50  ;;  %v2608_v30 = vrot.slane %v2600_v19, %v4310_v39  ;;  %v2536_v32 = vsel %vm4359_vm1, %v5103_v43, %v2535_v2  ;;  %v2860_v5 = vcombine.low %v2852_v34, %v2859_v25 }
 0x278   :  { %v2599_v0 = vcombine.low %v2591_v11, %v2598_v29  ;;  %v2530_v60 = vsel %vm4359_vm1, %v2528_v3, %v2529_v59  ;;  %v2531_v36 = vrot.slane %v2529_v59, 2  ;;  %v2537_v33 = vrot.slane %v2535_v2, 2 }
 0x279   :  { %v2615_v52 = vrot.slane %v2601_v54, %v4310_v39  ;;  %v2617_v28 = vcombine.low %v2527_v18, %v2530_v60  ;;  %v5375_v22 = vrot.slane %v5085_v6, 7  ;;  %v2541_v38 = vrot.slane %v5096_v7, 7  ;;  %3707 = vmatmul.mubr.msk.f32.gmra.mxu1 %vm2651_vm0, %v2860_v5 }
 0x27a   :  { %3690 = vmatprep.mubr.msk.f32.mxu0 %vm2651_vm0, %v2599_v0  ;;  %v5376_v43 = vcombine.low %v4901_v23, %v4904_v12  ;;  %v5377_v26 = vrot.slane %v5076_v21, 7  ;;  %v2971_v51 = vcombine.low %v4877_v41, %v4880_v46  ;;  %v2548_v12 = vsel %vm4359_vm1, %v2546_v61, %v2547_v15 }
 0x27b   :  { %v2540_v42 = vrot.slane %v5375_v22, 2  ;;  %v5378_v37 = vmov %v5375_v22  ;;  %v2616_v11 = vcombine.low %v2608_v30, %v2615_v52  ;;  %v2625_v9 = vrot.slane %v2617_v28, %v4310_v39  ;;  %v3409_v52 = vld [vmem:[#allocation5] ss:$0 sm:$0xff] }
 0x27c   :  { %v2996_v45 = vrot.slane %v5376_v43, %v4310_v39  ;;  %v2533_v2 = vsel %vm4359_vm1, %v2531_v36, %v5377_v26  ;;  %v2539_v50 = vsel %vm4359_vm1, %v2537_v33, %v5378_v37  ;;  %v2543_v17 = vrot.slane %v2541_v38, 2 }
 0x27d   :  { %v2618_v14 = vcombine.low %v2533_v2, %v2536_v32  ;;  %v2542_v23 = vsel %vm4359_vm1, %v2540_v42, %v2541_v38  ;;  %v2972_v56 = vcombine.low %v4885_v47, %v4892_v40  ;;  %3691 = vmatmul.mubr.msk.f32.gmra.mxu0 %vm2651_vm0, %v2616_v11  ;;  %v3005_v46 = vcombine.low %v4969_v8, %v4972_v4 }
 0x27e   :  { %v2634_v48 = vcombine.low %v2539_v50, %v2542_v23  ;;  %v3004_v41 = vcombine.low %v2996_v45, %v4994_v49  ;;  %v3006_v29 = vcombine.low %v4979_v57, %v5008_v58  ;;  %v2545_v61 = vsel %vm4359_vm1, %v2543_v17, %v2544_v16  ;;  %v3410_v50 = vld [vmem:[%s5345_s7] ss:$0 sm:$0xff] }
 0x27f   :  { %v2632_v31 = vrot.slane %v2618_v14, %v4310_v39  ;;  %v2979_v15 = vrot.slane %v2971_v51, %v4310_v39  ;;  %v2986_v47 = vrot.slane %v2972_v56, %v4310_v39  ;;  %v3022_v40 = vcombine.low %v5017_v1, %v5020_v24 }
 0x280   :  { %v2635_v49 = vcombine.low %v2545_v61, %v2548_v12  ;;  %v3013_v34 = vrot.slane %v3005_v46, %v4310_v39  ;;  %v3020_v8 = vrot.slane %v3006_v29, %v4310_v39  ;;  %v2642_v4 = vrot.slane %v2634_v48, %v4310_v39 }
 0x281   :  { %v2633_v19 = vcombine.low %v2625_v9, %v2632_v31  ;;  %v2987_v57 = vcombine.low %v2979_v15, %v2986_v47  ;;  %v3023_v20 = vcombine.low %v5053_v63, %v5060_v10  ;;  %v3039_v58 = vcombine.low %v5056_v44, %v5063_v13 }
 0x282   :  { %v2649_v16 = vrot.slane %v2635_v49, %v4310_v39  ;;  %v3021_v1 = vcombine.low %v3013_v34, %v3020_v8  ;;  %v3040_v24 = vcombine.low %v5076_v21, %v5082_v62  ;;  %v3056_v3 = vcombine.low %v5085_v6, %v5096_v7 }
 0x283   :  { %3693 = vmatprep.mubr.msk.f32.mxu0 %vm2651_vm0, %v2633_v19  ;;  %v3030_v53 = vrot.slane %v3022_v40, %v4310_v39  ;;  %v3037_v25 = vrot.slane %v3023_v20, %v4310_v39  ;;  %v3057_v63 = vcombine.low %v5155_v55, %v5171_v27  ;;  %v3047_v44 = vrot.slane %v3039_v58, %v4310_v39 }
 0x284   :  { %v2650_v10 = vcombine.low %v2642_v4, %v2649_v16  ;;  %v3054_v13 = vrot.slane %v3040_v24, %v4310_v39  ;;  %v3064_v59 = vrot.slane %v3056_v3, %v4310_v39 }
 0x285   :  { %v3038_v18 = vcombine.low %v3030_v53, %v3037_v25  ;;  %v3071_v21 = vrot.slane %v3057_v63, %v4310_v39  ;;  %v3206_v39 = vld [vmem:[%s5345_s7 + $0x1] sm:$0x1] }
 0x286   :  { %3694 = vmatmul.mubr.msk.f32.gmra.mxu0 %vm2651_vm0, %v2650_v10  ;;  %v3055_v62 = vcombine.low %v3047_v44, %v3054_v13  ;;  %3724 = vpush %v3206_v39 }
 0x287   :  { %3713 = vmatprep.mubr.msk.f32.mxu0 %vm2651_vm0, %v2987_v57  ;;  %v3072_v6 = vcombine.low %v3064_v59, %v3071_v21 }
 0x28a   :  { %3714 = vmatmul.mubr.msk.f32.vlgmr.msra.gmra.mxu0 %vm2651_vm0, %v3004_v41 }
 0x28b   :  { %3716 = vmatprep.mubr.msk.f32.mxu0 %vm2651_vm0, %v3021_v1 }
 0x28e   :  { %3717 = vmatmul.mubr.msk.f32.gmra.mxu0 %vm2651_vm0, %v3038_v18  ;;  %v5379_v18 = vlaneseq }
 0x28f   :  { %3719 = vmatprep.mubr.msk.f32.mxu0 %vm2651_vm0, %v3055_v62 }
 0x290   :  { %v3252_v59 = vand.u32 127, %v5379_v18 }
 0x292   :  { %3720 = vmatmul.mubr.msk.f32.gmra.mxu0 %vm2651_vm0, %v3072_v6  ;;  %v3264_v6 = vadd.s32 4294967280, %v3252_v59  ;;  %v3257_v39 = vadd.s32 4294967288, %v3252_v59 }
 0x2b7   :  { %s3725_s7 = spop %3724 }
 0x325   :  { %v3702_v0 = vpop.f32.mrf.mxu1 }
 0x327   :  { %v2939_v30 = vpop.f32.mrf.mxu1 }
 0x330   :  { %v3689_v7 = vpop.f32.mrf.mxu0  ;;  %v3705_v5 = vpop.f32.mrf.mxu1 }
 0x331   :  { %v2945_v36 = vadd.f32 %v3702_v0, %v3689_v7 }
 0x332   :  { %v2730_v55 = vpop.f32.mrf.mxu0  ;;  %v2949_v22 = vpop.f32.mrf.mxu1 }
 0x333   :  { %v2940_v28 = vadd.f32 %v2939_v30, %v2730_v55  ;;  %v3237_v55 = vstv %s3725_s7  ;;  %v3267_v30 = vsub.s32 %v3264_v6, %v4288_v35 }
 0x339   :  { %v3708_v45 = vpop.f32.mrf.mxu1 }
 0x33b   :  { %v2959_v17 = vpop.f32.mrf.mxu1 }
 0x33d   :  { %v3692_v27 = vpop.f32.mrf.mxu0 }
 0x33e   :  { %v2955_v43 = vadd.f32 %v3705_v5, %v3692_v27  ;;  %v3255_v27 = vsub.s32 %v3252_v59, %v4288_v35 }
 0x33f   :  { %v2740_v54 = vpop.f32.mrf.mxu0 }
 0x340   :  { %v2950_v51 = vadd.f32 %v2949_v22, %v2740_v54 }
 0x346   :  { %v3695_v32 = vpop.f32.mrf.mxu0 }
 0x347   :  { %v2965_v12 = vadd.f32 %v3708_v45, %v3695_v32 }
 0x348   :  { %v2750_v60 = vpop.f32.mrf.mxu0 }
 0x349   :  { %v2960_v46 = vadd.f32 %v2959_v17, %v2750_v60  ;;  %v3260_v60 = vsub.s32 %v3257_v39, %v4288_v35 }
 0x34a   :  { %v3715_v33 = vpop.f32.mrf.mxu0 }
 0x34b   :  { %v3181_v42 = vadd.f32 %v3715_v33, %v2945_v36 }
 0x34c   :  { %v3151_v38 = vpop.f32.mrf.mxu0 }
 0x34d   :  { %v3194_v26 = vadd.f32 %v3409_v52, %v3181_v42  ;;  %v3180_v2 = vadd.f32 %v3151_v38, %v2940_v28 }
 0x34e   :  { %v3718_v37 = vpop.f32.mrf.mxu0 }
 0x34f   :  { %v3200_v11 = vmax.f32 %v3194_v26, 0.0  ;;  %v3193_v14 = vadd.f32 %v3409_v52, %v3180_v2  ;;  %v3183_v23 = vadd.f32 %v3718_v37, %v2955_v43 }
 0x350   :  { %v3161_v9 = vpop.f32.mrf.mxu0 }
 0x351   :  { %v3199_v48 = vmax.f32 %v3193_v14, 0.0  ;;  %v3196_v56 = vadd.f32 %v3409_v52, %v3183_v23  ;;  %v3182_v31 = vadd.f32 %v3161_v9, %v2950_v51  ;;  %v3212_v41 = vmul.f32 %v3410_v50, %v3200_v11 }
 0x352   :  { %v3721_v29 = vpop.f32.mrf.mxu0 }
 0x353   :  { %v3202_v61 = vmax.f32 %v3196_v56, 0.0  ;;  %v3195_v15 = vadd.f32 %v3409_v52, %v3182_v31  ;;  %v3185_v47 = vadd.f32 %v3721_v29, %v2965_v12  ;;  %v3220_v40 = vsel %vm2651_vm0, %v3212_v41, 0.0 }
 0x354   :  { %3221 = vadd.xlane.f32.xlu0 %v3220_v40  ;;  %v3171_v19 = vpop.f32.mrf.mxu0  ;;  %v3211_v49 = vmul.f32 %v3410_v50, %v3199_v48 }
 0x355   :  { %v3201_v34 = vmax.f32 %v3195_v15, 0.0  ;;  %v3198_v8 = vadd.f32 %v3409_v52, %v3185_v47  ;;  %v3184_v4 = vadd.f32 %v3171_v19, %v2960_v46  ;;  %v3214_v57 = vmul.f32 %v3410_v50, %v3202_v61 }
 0x356   :  { %v3217_v58 = vsel %vm2651_vm0, %v3211_v49, 0.0 }
 0x357   :  { %v3197_v20 = vadd.f32 %v3409_v52, %v3184_v4  ;;  %v3226_v16 = vsel %vm2651_vm0, %v3214_v57, 0.0  ;;  %v3213_v1 = vmul.f32 %v3410_v50, %v3201_v34  ;;  %v3204_v24 = vmax.f32 %v3198_v8, 0.0 }
 0x358   :  { %3218 = vadd.xlane.f32.xlu0 %v3217_v58  ;;  %3227 = vadd.xlane.f32.xlu1 %v3226_v16 }
 0x359   :  { %v3203_v3 = vmax.f32 %v3197_v20, 0.0  ;;  %v3223_v53 = vsel %vm2651_vm0, %v3213_v1, 0.0  ;;  %v3216_v10 = vmul.f32 %v3410_v50, %v3204_v24 }
 0x35b   :  { %v3215_v25 = vmul.f32 %v3410_v50, %v3203_v3  ;;  %v3232_v44 = vsel %vm2651_vm0, %v3216_v10, 0.0 }
 0x35c   :  { %3224 = vadd.xlane.f32.xlu0 %v3223_v53 }
 0x35d   :  { %v3229_v63 = vsel %vm2651_vm0, %v3215_v25, 0.0 }
 0x35e   :  { %3230 = vadd.xlane.f32.xlu1 %v3229_v63 }
 0x362   :  { %3233 = vadd.xlane.f32.xlu1 %v3232_v44 }
 0x3dd   :  { %v3222_v13 = vpop.xlane.xlu0 %3221 }
 0x3de   :  { %v3240_v36 = vadd.f32 %v3237_v55, %v3222_v13 }
 0x3e0   :  { %v3261_v43 = vrot.slane %v3240_v36, %v3260_v60 }
 0x3e1   :  { %v3219_v21 = vpop.xlane.xlu0 %3218  ;;  %v3228_v62 = vpop.xlane.xlu1 %3227 }
 0x3e2   :  { %v3239_v0 = vadd.f32 %v3237_v55, %v3219_v21  ;;  %v3242_v33 = vadd.f32 %v3237_v55, %v3228_v62 }
 0x3e4   :  { %v3256_v52 = vrot.slane %v3239_v0, %v3255_v27  ;;  %v3274_v45 = vrot.slane %v3242_v33, %v3255_v27 }
 0x3e5   :  { %v3225_v7 = vpop.xlane.xlu0 %3224 }
 0x3e6   :  { %v3241_v32 = vadd.f32 %v3237_v55, %v3225_v7  ;;  %v3263_v2 = vsel %vm3262_vm3, %v3261_v43, %v3256_v52 }
 0x3e7   :  { %v3231_v54 = vpop.xlane.xlu1 %3230 }
 0x3e8   :  { %v3243_v5 = vadd.f32 %v3237_v55, %v3231_v54  ;;  %v3268_v42 = vrot.slane %v3241_v32, %v3267_v30 }
 0x3ea   :  { %v3278_v28 = vrot.slane %v3243_v5, %v3260_v60  ;;  %v3270_v50 = vsel %vm3269_vm4, %v3268_v42, %v3263_v2 }
 0x3eb   :  { %v3234_v22 = vpop.xlane.xlu1 %3233 }
 0x3ec   :  { %v3244_v38 = vadd.f32 %v3237_v55, %v3234_v22  ;;  %v3279_v37 = vsel %vm3262_vm3, %v3278_v28, %v3274_v45 }
 0x3ee   :  { %v3283_v26 = vrot.slane %v3244_v38, %v3267_v30 }
 0x3f0   :  { %v3284_v35 = vsel %vm3269_vm4, %v3283_v26, %v3279_v37 }
 0x3f1   :  { %v3286_v51 = vsel %vm3285_vm5, %v3284_v35, %v3270_v50 }
 0x3f2   :  { %3289 = vst.msk [vmem:[#allocation7] sm:$0x3] %vm3288_vm6, %v3286_v51 }
 0x3f3   :  { %3795 = shalt.err (!%p3792_p0)
}
 0x3f4   :  { %3299 = dma.vmem_to_hbm [thread:$0]  %s3297_s15, 32, %s5346_s8, [#allocation4]  }
 0x3f5   :  { %3808 = dma.done.wait [#allocation4], 32  }
 0x3f6   :  { %3809 = vsyncadd [#allocation4], 4294967264 }
 0x3f7   :  { %3303 = vsyncpa [#allocation3], 1 }
 0x3f8   :  { %3304 = vsyncpa [#allocation6], 1 }
 0x3f9   :  { %3305 = vsyncpa [#allocation4], 1 }

</bundles_post_ra>
